<compile_context>
chip_gen: v7x
topology: tpu7x:2x2x1
jax: 0.10.0
libtpu: 0.0.40
codegen_flags: <defaults>
</compile_context>

<pallas_src>
import math

import jax
import jax.numpy as jnp
from jax.experimental import pallas as pl
from jax.experimental.pallas import tpu as pltpu


# ----------------------------- in-kernel helpers -----------------------------

def _linear(x, w, b):
    # x: (M, in), w: (in, out)  [pre-transposed in the wrapper], b: (1, out)
    return jnp.dot(x, w, preferred_element_type=jnp.float32) + b


def _layer_norm(v, g, b, eps=1e-5):
    mu = jnp.mean(v, axis=-1, keepdims=True)
    var = jnp.mean((v - mu) ** 2, axis=-1, keepdims=True)
    return (v - mu) * jax.lax.rsqrt(var + eps) * g + b


def _softmax_last(x):
    m = jnp.max(x, axis=-1, keepdims=True)
    e = jnp.exp(x - m)
    # NOTE: pl.reciprocal(approx=True) would move this to the EUP slot but
    # loosens precision; kept exact to match the f32 reference tightly.
    return e / jnp.sum(e, axis=-1, keepdims=True)


# --------------------------------- kernel ------------------------------------

def _make_kernel(B, S, L, D, H, DFF):
    N = B * S
    dh = D // H
    scale = 1.0 / math.sqrt(dh)

    def kernel(x_ref, pk_ref, pv_ref, hmask_ref,
               t_inw_ref, t_inb_ref, t_outw_ref, t_outb_ref,
               s_inw_ref, s_inb_ref, s_outw_ref, s_outb_ref,
               w1_ref, b1_ref, w2_ref, b2_ref,
               g1_ref, be1_ref, g2_ref, be2_ref, g3_ref, be3_ref,
               out_ref,
               attn_scr):
        x = x_ref[...]                                          # (N, D)
        M = hmask_ref[...]                                      # (D, D) block-diag head mask

        # ---- temporal attention: fused QKV projection for the new frame
        qkv = _linear(x, t_inw_ref[...], t_inb_ref[...])        # (N, 3D)
        q = qkv[:, 0:D] * scale                                 # scale hoisted
        k_new = qkv[:, D:2 * D]
        v_new = qkv[:, 2 * D:3 * D]

        # ---- batched projection of the raw past keys / values (one matmul each)
        Wk = t_inw_ref[:, D:2 * D]                              # (D, D)
        Wv = t_inw_ref[:, 2 * D:3 * D]
        bk = t_inb_ref[:, D:2 * D]
        bv = t_inb_ref[:, 2 * D:3 * D]
        k_past3 = _linear(pk_ref[...].reshape(N * L, D), Wk, bk).reshape(N, L, D)
        v_past3 = _linear(pv_ref[...].reshape(N * L, D), Wv, bv).reshape(N, L, D)

        # ---- all-head temporal attention (query length 1) with the head-mask
        # matmul trick: sc[n,t,d] = sum_{d' in head(d)} q[n,d'] * K[n,t,d'],
        # i.e. per-head scores replicated across that head's dh lanes.
        sc_past = jnp.dot((q[:, None, :] * k_past3).reshape(N * L, D), M,
                          preferred_element_type=jnp.float32).reshape(N, L, D)
        sc_new = jnp.dot(q * k_new, M,
                         preferred_element_type=jnp.float32)    # (N, D)

        # two-piece softmax over the L past slots + 1 new slot
        mmax = jnp.maximum(jnp.max(sc_past, axis=1, keepdims=True),
                           sc_new[:, None, :])                  # (N, 1, D)
        e_past = jnp.exp(sc_past - mmax)                        # (N, L, D)
        e_new = jnp.exp(sc_new[:, None, :] - mmax)              # (N, 1, D)
        denom = jnp.sum(e_past, axis=1, keepdims=True) + e_new  # (N, 1, D)
        numer = (jnp.sum(e_past * v_past3, axis=1, keepdims=True)
                 + e_new * v_new[:, None, :])                   # (N, 1, D)
        ctx = (numer / denom)[:, 0, :]                          # (N, D)

        attn = _linear(ctx, t_outw_ref[...], t_outb_ref[...])
        temp = _layer_norm(attn + x, g1_ref[...], be1_ref[...])   # norm1, (N, D)

        # ---- speaker self-attention over the S slots, batched over B
        qkv2 = _linear(temp, s_inw_ref[...], s_inb_ref[...])      # (N, 3D)
        q2 = (qkv2[:, 0:D] * scale).reshape(B, S, D)
        k2 = qkv2[:, D:2 * D].reshape(B, S, D)
        v2 = qkv2[:, 2 * D:3 * D].reshape(B, S, D)
        for h in range(H):
            lo, hi = h * dh, (h + 1) * dh
            sc = jnp.einsum('bqd,bkd->bqk', q2[:, :, lo:hi], k2[:, :, lo:hi],
                            preferred_element_type=jnp.float32)   # (B, S, S)
            p = _softmax_last(sc)
            ctxh = jnp.einsum('bqk,bkd->bqd', p, v2[:, :, lo:hi],
                              preferred_element_type=jnp.float32)  # (B, S, dh)
            attn_scr[:, lo:hi] = ctxh.reshape(N, dh)
        spk = _linear(attn_scr[...], s_outw_ref[...], s_outb_ref[...])
        spk = _layer_norm(spk + temp, g2_ref[...], be2_ref[...])  # norm2

        # ---- feed-forward block
        h1 = jnp.maximum(_linear(spk, w1_ref[...], b1_ref[...]), 0.0)  # (N, DFF)
        ff = _linear(h1, w2_ref[...], b2_ref[...])                     # (N, D)
        out_ref[...] = _layer_norm(ff + spk, g3_ref[...], be3_ref[...])  # norm3

    return kernel


# --------------------------------- wrapper -----------------------------------

def streaming_attractor_decoder_layer(x, past_key, past_value, params):
    """x: (B, 1, S, D); past_key/past_value: (B*S, L, D).
    Returns (output (B,1,S,D), new_key (B*S,L+1,D), new_value (B*S,L+1,D))."""
    B, T1, S, D = x.shape
    assert T1 == 1, "Input should be a single time frame"
    L = past_key.shape[1]
    H = params["nhead"]
    DFF = params["w1"].shape[0]
    N = B * S
    dh = D // H

    x2 = x[:, 0].reshape(N, D)                      # row n = b*S + s

    # Block-diagonal head mask: M[i, j] = 1 iff lanes i and j belong to the
    # same head.  Lets the kernel compute all-head scores with one full-width
    # MXU matmul instead of H narrow lane-sliced matmuls.
    lane = jnp.arange(D)
    head_mask = (lane[:, None] // dh == lane[None, :] // dh).astype(jnp.float32)

    kernel = _make_kernel(B, S, L, D, H, DFF)

    def full_spec(shape):
        nd = len(shape)
        return pl.BlockSpec(shape, lambda i, _nd=nd: (0,) * _nd)

    # Pre-transpose weights to (in, out) so in-kernel matmuls are plain (M,K)@(K,N).
    args = (
        x2, past_key, past_value, head_mask,
        params["t_in_w"].T, params["t_in_b"], params["t_out_w"].T, params["t_out_b"],
        params["s_in_w"].T, params["s_in_b"], params["s_out_w"].T, params["s_out_b"],
        params["w1"].T, params["b1"], params["w2"].T, params["b2"],
        params["g1"], params["be1"], params["g2"], params["be2"],
        params["g3"], params["be3"],
    )

    out = pl.pallas_call(
        kernel,
        grid=(1,),
        in_specs=[full_spec(a.shape) for a in args],
        out_specs=full_spec((N, D)),
        out_shape=jax.ShapeDtypeStruct((N, D), jnp.float32),
        scratch_shapes=[
            pltpu.VMEM((N, D), jnp.float32),      # speaker-attention head outputs
        ],
    )(*args)

    output = out.reshape(B, S, D)[:, None, :, :]    # (B, 1, S, D)

    # New (raw, unprojected) temporal KV caches: a pure pass-through concat,
    # done here as one bulk XLA copy instead of round-tripping through the kernel.
    x_temp = x2[:, None, :]                         # (N, 1, D)
    new_key = jnp.concatenate([past_key, x_temp], axis=1)
    new_value = jnp.concatenate([past_value, x_temp], axis=1)
    return output, new_key, new_value


# --------------------------- pure-JAX reference -------------------------------

def reference(x, past_key, past_value, p, H):
    B, _, S, D = x.shape
    dh = D // H

    x_temp = jnp.transpose(x, (0, 2, 1, 3)).reshape(B * S, 1, D)
    comb_k = jnp.concatenate([past_key, x_temp], axis=1)
    comb_v = jnp.concatenate([past_value, x_temp], axis=1)

    def mha(q, k, v, in_w, in_b, out_w, out_b):
        Wq, Wk, Wv = in_w[:D], in_w[D:2 * D], in_w[2 * D:]
        bq, bk, bv = in_b[0, :D], in_b[0, D:2 * D], in_b[0, 2 * D:]
        qp, kp, vp = q @ Wq.T + bq, k @ Wk.T + bk, v @ Wv.T + bv
        Nn, Lq, _ = q.shape
        Lk = k.shape[1]
        qh = qp.reshape(Nn, Lq, H, dh).transpose(0, 2, 1, 3)
        kh = kp.reshape(Nn, Lk, H, dh).transpose(0, 2, 1, 3)
        vh = vp.reshape(Nn, Lk, H, dh).transpose(0, 2, 1, 3)
        sc = jnp.einsum("nhqd,nhkd->nhqk", qh, kh) / math.sqrt(dh)
        w = jax.nn.softmax(sc, axis=-1)
        o = jnp.einsum("nhqk,nhkd->nhqd", w, vh).transpose(0, 2, 1, 3).reshape(Nn, Lq, D)
        return o @ out_w.T + out_b[0]

    def ln(v, g, b):
        mu = v.mean(-1, keepdims=True)
        var = ((v - mu) ** 2).mean(-1, keepdims=True)
        return (v - mu) / jnp.sqrt(var + 1e-5) * g[0] + b[0]

    attn = mha(x_temp, comb_k, comb_v, p["t_in_w"], p["t_in_b"], p["t_out_w"], p["t_out_b"])
    temp = ln(attn + x_temp, p["g1"], p["be1"]).reshape(B, S, D)
    spk = mha(temp, temp, temp, p["s_in_w"], p["s_in_b"], p["s_out_w"], p["s_out_b"])
    spk = ln(spk + temp, p["g2"], p["be2"])
    h1 = jax.nn.relu(spk @ p["w1"].T + p["b1"][0])
    ff = h1 @ p["w2"].T + p["b2"][0]
    out = ln(ff + spk, p["g3"], p["be3"])
    return out[:, None, :, :], comb_k, comb_v


# --------------------------------- params ------------------------------------

def init_params(key, D, H, DFF):
    ks = jax.random.split(key, 16)

    def rnd(k, shape, s=0.1):
        return jax.random.normal(k, shape, dtype=jnp.float32) * s

    return dict(
        nhead=H,
        t_in_w=rnd(ks[0], (3 * D, D)), t_in_b=rnd(ks[1], (1, 3 * D)),
        t_out_w=rnd(ks[2], (D, D)), t_out_b=rnd(ks[3], (1, D)),
        s_in_w=rnd(ks[4], (3 * D, D)), s_in_b=rnd(ks[5], (1, 3 * D)),
        s_out_w=rnd(ks[6], (D, D)), s_out_b=rnd(ks[7], (1, D)),
        w1=rnd(ks[8], (DFF, D)), b1=rnd(ks[9], (1, DFF)),
        w2=rnd(ks[10], (D, DFF)), b2=rnd(ks[11], (1, D)),
        g1=1.0 + rnd(ks[12], (1, D), 0.05), be1=rnd(ks[13], (1, D), 0.05),
        g2=1.0 + rnd(ks[14], (1, D), 0.05), be2=rnd(ks[15], (1, D), 0.05),
        g3=jnp.ones((1, D), jnp.float32), be3=jnp.zeros((1, D), jnp.float32),
    )


# ----------------------------------- main -------------------------------------

if __name__ == "__main__":
    B, S, D, H, DFF, L = 2, 4, 32, 4, 64, 8

    key = jax.random.PRNGKey(0)
    kx, kk, kv, kp = jax.random.split(key, 4)
    x = jax.random.normal(kx, (B, 1, S, D), dtype=jnp.float32)
    past_key = jax.random.normal(kk, (B * S, L, D), dtype=jnp.float32)
    past_value = jax.random.normal(kv, (B * S, L, D), dtype=jnp.float32)
    params = init_params(kp, D, H, DFF)

    out, new_key, new_value = streaming_attractor_decoder_layer(x, past_key, past_value, params)
    jax.block_until_ready((out, new_key, new_value))

    ro, rk, rv = reference(x, past_key, past_value, params, H)
    assert out.shape == (B, 1, S, D)
    assert new_key.shape == (B * S, L + 1, D) and new_value.shape == (B * S, L + 1, D)
    assert jnp.allclose(out, ro, atol=2e-4, rtol=2e-4)
    assert jnp.allclose(new_key, rk, atol=1e-6)
    assert jnp.allclose(new_value, rv, atol=1e-6)

    print("KERNEL_OK")
</pallas_src>

<mosaic_0001>
module attributes {stable_mosaic.version = 11 : i64} {
  func.func @kernel(%arg0: i32, %arg1: memref<8x32xf32, #tpu.memory_space<vmem>>, %arg2: memref<8x8x32xf32, #tpu.memory_space<vmem>>, %arg3: memref<8x8x32xf32, #tpu.memory_space<vmem>>, %arg4: memref<32x32xf32, #tpu.memory_space<vmem>>, %arg5: memref<32x96xf32, #tpu.memory_space<vmem>>, %arg6: memref<1x96xf32, #tpu.memory_space<vmem>>, %arg7: memref<32x32xf32, #tpu.memory_space<vmem>>, %arg8: memref<1x32xf32, #tpu.memory_space<vmem>>, %arg9: memref<32x96xf32, #tpu.memory_space<vmem>>, %arg10: memref<1x96xf32, #tpu.memory_space<vmem>>, %arg11: memref<32x32xf32, #tpu.memory_space<vmem>>, %arg12: memref<1x32xf32, #tpu.memory_space<vmem>>, %arg13: memref<32x64xf32, #tpu.memory_space<vmem>>, %arg14: memref<1x64xf32, #tpu.memory_space<vmem>>, %arg15: memref<64x32xf32, #tpu.memory_space<vmem>>, %arg16: memref<1x32xf32, #tpu.memory_space<vmem>>, %arg17: memref<1x32xf32, #tpu.memory_space<vmem>>, %arg18: memref<1x32xf32, #tpu.memory_space<vmem>>, %arg19: memref<1x32xf32, #tpu.memory_space<vmem>>, %arg20: memref<1x32xf32, #tpu.memory_space<vmem>>, %arg21: memref<1x32xf32, #tpu.memory_space<vmem>>, %arg22: memref<1x32xf32, #tpu.memory_space<vmem>>, %arg23: memref<8x32xf32, #tpu.memory_space<vmem>>, %arg24: memref<8x32xf32, #tpu.memory_space<vmem>>) attributes {dimension_semantics = [#tpu.dimension_semantics<arbitrary>], iteration_bounds = array<i64: 1>, scalar_prefetch = 0 : i64, scratch_operands = 1 : i64, tpu.core_type = #tpu.core_type<tc>, window_params = [{pipeline_mode = #tpu.pipeline_mode<synchronous>, transform_indices = @transform_0, window_bounds = array<i64: 8, 32>}, {pipeline_mode = #tpu.pipeline_mode<synchronous>, transform_indices = @transform_1, window_bounds = array<i64: 8, 8, 32>}, {pipeline_mode = #tpu.pipeline_mode<synchronous>, transform_indices = @transform_2, window_bounds = array<i64: 8, 8, 32>}, {pipeline_mode = #tpu.pipeline_mode<synchronous>, transform_indices = @transform_3, window_bounds = array<i64: 32, 32>}, {pipeline_mode = #tpu.pipeline_mode<synchronous>, transform_indices = @transform_4, window_bounds = array<i64: 32, 96>}, {pipeline_mode = #tpu.pipeline_mode<synchronous>, transform_indices = @transform_5, window_bounds = array<i64: 1, 96>}, {pipeline_mode = #tpu.pipeline_mode<synchronous>, transform_indices = @transform_6, window_bounds = array<i64: 32, 32>}, {pipeline_mode = #tpu.pipeline_mode<synchronous>, transform_indices = @transform_7, window_bounds = array<i64: 1, 32>}, {pipeline_mode = #tpu.pipeline_mode<synchronous>, transform_indices = @transform_8, window_bounds = array<i64: 32, 96>}, {pipeline_mode = #tpu.pipeline_mode<synchronous>, transform_indices = @transform_9, window_bounds = array<i64: 1, 96>}, {pipeline_mode = #tpu.pipeline_mode<synchronous>, transform_indices = @transform_10, window_bounds = array<i64: 32, 32>}, {pipeline_mode = #tpu.pipeline_mode<synchronous>, transform_indices = @transform_11, window_bounds = array<i64: 1, 32>}, {pipeline_mode = #tpu.pipeline_mode<synchronous>, transform_indices = @transform_12, window_bounds = array<i64: 32, 64>}, {pipeline_mode = #tpu.pipeline_mode<synchronous>, transform_indices = @transform_13, window_bounds = array<i64: 1, 64>}, {pipeline_mode = #tpu.pipeline_mode<synchronous>, transform_indices = @transform_14, window_bounds = array<i64: 64, 32>}, {pipeline_mode = #tpu.pipeline_mode<synchronous>, transform_indices = @transform_15, window_bounds = array<i64: 1, 32>}, {pipeline_mode = #tpu.pipeline_mode<synchronous>, transform_indices = @transform_16, window_bounds = array<i64: 1, 32>}, {pipeline_mode = #tpu.pipeline_mode<synchronous>, transform_indices = @transform_17, window_bounds = array<i64: 1, 32>}, {pipeline_mode = #tpu.pipeline_mode<synchronous>, transform_indices = @transform_18, window_bounds = array<i64: 1, 32>}, {pipeline_mode = #tpu.pipeline_mode<synchronous>, transform_indices = @transform_19, window_bounds = array<i64: 1, 32>}, {pipeline_mode = #tpu.pipeline_mode<synchronous>, transform_indices = @transform_20, window_bounds = array<i64: 1, 32>}, {pipeline_mode = #tpu.pipeline_mode<synchronous>, transform_indices = @transform_21, window_bounds = array<i64: 1, 32>}, {pipeline_mode = #tpu.pipeline_mode<synchronous>, transform_indices = @transform_22, window_bounds = array<i64: 8, 32>}]} {
    %c0 = arith.constant 0 : index
    %c0_0 = arith.constant 0 : index
    %0 = vector.load %arg1[%c0, %c0_0] : memref<8x32xf32, #tpu.memory_space<vmem>>, vector<8x32xf32>
    %c0_1 = arith.constant 0 : index
    %c0_2 = arith.constant 0 : index
    %1 = vector.load %arg4[%c0_1, %c0_2] : memref<32x32xf32, #tpu.memory_space<vmem>>, vector<32x32xf32>
    %c0_3 = arith.constant 0 : index
    %c0_4 = arith.constant 0 : index
    %2 = vector.load %arg5[%c0_3, %c0_4] : memref<32x96xf32, #tpu.memory_space<vmem>>, vector<32x96xf32>
    %c0_5 = arith.constant 0 : index
    %c0_6 = arith.constant 0 : index
    %3 = vector.load %arg6[%c0_5, %c0_6] : memref<1x96xf32, #tpu.memory_space<vmem>>, vector<1x96xf32>
    %cst = arith.constant dense<0.000000e+00> : vector<8x96xf32>
    %4 = tpu.matmul %0, %2, %cst {dimension_numbers = #tpu.dot_dimension_numbers<[1], [0], [0], [1], [0, 0, 1, 1], [], []>} : vector<8x32xf32>, vector<32x96xf32>, vector<8x96xf32> -> vector<8x96xf32>
    %5 = vector.broadcast %3 : vector<1x96xf32> to vector<8x96xf32>
    %6 = arith.addf %4, %5 : vector<8x96xf32>
    %7 = vector.extract_strided_slice %6 {offsets = [0, 0], sizes = [8, 32], strides = [1, 1]} : vector<8x96xf32> to vector<8x32xf32>
    %cst_7 = arith.constant 0.353553385 : f32
    %8 = vector.broadcast %cst_7 : f32 to vector<8x32xf32>
    %9 = arith.mulf %7, %8 : vector<8x32xf32>
    %10 = vector.extract_strided_slice %6 {offsets = [0, 32], sizes = [8, 32], strides = [1, 1]} : vector<8x96xf32> to vector<8x32xf32>
    %11 = vector.extract_strided_slice %6 {offsets = [0, 64], sizes = [8, 32], strides = [1, 1]} : vector<8x96xf32> to vector<8x32xf32>
    %c0_8 = arith.constant 0 : index
    %c32 = arith.constant 32 : index
    %12 = vector.load %arg5[%c0_8, %c32] : memref<32x96xf32, #tpu.memory_space<vmem>>, vector<32x32xf32>
    %c0_9 = arith.constant 0 : index
    %c64 = arith.constant 64 : index
    %13 = vector.load %arg5[%c0_9, %c64] : memref<32x96xf32, #tpu.memory_space<vmem>>, vector<32x32xf32>
    %c0_10 = arith.constant 0 : index
    %c32_11 = arith.constant 32 : index
    %14 = vector.load %arg6[%c0_10, %c32_11] : memref<1x96xf32, #tpu.memory_space<vmem>>, vector<1x32xf32>
    %c0_12 = arith.constant 0 : index
    %c64_13 = arith.constant 64 : index
    %15 = vector.load %arg6[%c0_12, %c64_13] : memref<1x96xf32, #tpu.memory_space<vmem>>, vector<1x32xf32>
    %c0_14 = arith.constant 0 : index
    %c0_15 = arith.constant 0 : index
    %c0_16 = arith.constant 0 : index
    %16 = vector.load %arg2[%c0_14, %c0_15, %c0_16] : memref<8x8x32xf32, #tpu.memory_space<vmem>>, vector<8x8x32xf32>
    %17 = vector.shape_cast %16 : vector<8x8x32xf32> to vector<64x32xf32>
    %cst_17 = arith.constant dense<0.000000e+00> : vector<64x32xf32>
    %18 = tpu.matmul %17, %12, %cst_17 {dimension_numbers = #tpu.dot_dimension_numbers<[1], [0], [0], [1], [0, 0, 1, 1], [], []>} : vector<64x32xf32>, vector<32x32xf32>, vector<64x32xf32> -> vector<64x32xf32>
    %19 = vector.broadcast %14 : vector<1x32xf32> to vector<64x32xf32>
    %20 = arith.addf %18, %19 : vector<64x32xf32>
    %21 = vector.shape_cast %20 : vector<64x32xf32> to vector<8x8x32xf32>
    %c0_18 = arith.constant 0 : index
    %c0_19 = arith.constant 0 : index
    %c0_20 = arith.constant 0 : index
    %22 = vector.load %arg3[%c0_18, %c0_19, %c0_20] : memref<8x8x32xf32, #tpu.memory_space<vmem>>, vector<8x8x32xf32>
    %23 = vector.shape_cast %22 : vector<8x8x32xf32> to vector<64x32xf32>
    %cst_21 = arith.constant dense<0.000000e+00> : vector<64x32xf32>
    %24 = tpu.matmul %23, %13, %cst_21 {dimension_numbers = #tpu.dot_dimension_numbers<[1], [0], [0], [1], [0, 0, 1, 1], [], []>} : vector<64x32xf32>, vector<32x32xf32>, vector<64x32xf32> -> vector<64x32xf32>
    %25 = vector.broadcast %15 : vector<1x32xf32> to vector<64x32xf32>
    %26 = arith.addf %24, %25 : vector<64x32xf32>
    %27 = vector.shape_cast %26 : vector<64x32xf32> to vector<8x8x32xf32>
    %28 = vector.shape_cast %9 : vector<8x32xf32> to vector<8x1x32xf32>
    %29 = vector.broadcast %28 : vector<8x1x32xf32> to vector<8x8x32xf32>
    %30 = arith.mulf %29, %21 : vector<8x8x32xf32>
    %31 = vector.shape_cast %30 : vector<8x8x32xf32> to vector<64x32xf32>
    %cst_22 = arith.constant dense<0.000000e+00> : vector<64x32xf32>
    %32 = tpu.matmul %31, %1, %cst_22 {dimension_numbers = #tpu.dot_dimension_numbers<[1], [0], [0], [1], [0, 0, 1, 1], [], []>} : vector<64x32xf32>, vector<32x32xf32>, vector<64x32xf32> -> vector<64x32xf32>
    %33 = vector.shape_cast %32 : vector<64x32xf32> to vector<8x8x32xf32>
    %34 = arith.mulf %9, %10 : vector<8x32xf32>
    %cst_23 = arith.constant dense<0.000000e+00> : vector<8x32xf32>
    %35 = tpu.matmul %34, %1, %cst_23 {dimension_numbers = #tpu.dot_dimension_numbers<[1], [0], [0], [1], [0, 0, 1, 1], [], []>} : vector<8x32xf32>, vector<32x32xf32>, vector<8x32xf32> -> vector<8x32xf32>
    %cst_24 = arith.constant dense<0xFF800000> : vector<8x32xf32>
    %36 = vector.multi_reduction <maximumf>, %33, %cst_24 [1] : vector<8x8x32xf32> to vector<8x32xf32>
    %37 = vector.shape_cast %36 : vector<8x32xf32> to vector<8x1x32xf32>
    %38 = vector.shape_cast %35 : vector<8x32xf32> to vector<8x1x32xf32>
    %39 = arith.maximumf %37, %38 : vector<8x1x32xf32>
    %40 = vector.broadcast %39 : vector<8x1x32xf32> to vector<8x8x32xf32>
    %41 = arith.subf %33, %40 : vector<8x8x32xf32>
    %42 = math.exp %41 : vector<8x8x32xf32>
    %43 = vector.shape_cast %35 : vector<8x32xf32> to vector<8x1x32xf32>
    %44 = arith.subf %43, %39 : vector<8x1x32xf32>
    %45 = math.exp %44 : vector<8x1x32xf32>
    %cst_25 = arith.constant dense<0.000000e+00> : vector<8x32xf32>
    %46 = vector.multi_reduction <add>, %42, %cst_25 [1] : vector<8x8x32xf32> to vector<8x32xf32>
    %47 = vector.shape_cast %46 : vector<8x32xf32> to vector<8x1x32xf32>
    %48 = arith.addf %47, %45 : vector<8x1x32xf32>
    %49 = arith.mulf %42, %27 : vector<8x8x32xf32>
    %cst_26 = arith.constant dense<0.000000e+00> : vector<8x32xf32>
    %50 = vector.multi_reduction <add>, %49, %cst_26 [1] : vector<8x8x32xf32> to vector<8x32xf32>
    %51 = vector.shape_cast %50 : vector<8x32xf32> to vector<8x1x32xf32>
    %52 = vector.shape_cast %11 : vector<8x32xf32> to vector<8x1x32xf32>
    %53 = arith.mulf %45, %52 : vector<8x1x32xf32>
    %54 = arith.addf %51, %53 : vector<8x1x32xf32>
    %55 = arith.divf %54, %48 : vector<8x1x32xf32>
    %56 = vector.shape_cast %55 : vector<8x1x32xf32> to vector<8x32xf32>
    %c0_27 = arith.constant 0 : index
    %c0_28 = arith.constant 0 : index
    %57 = vector.load %arg7[%c0_27, %c0_28] : memref<32x32xf32, #tpu.memory_space<vmem>>, vector<32x32xf32>
    %c0_29 = arith.constant 0 : index
    %c0_30 = arith.constant 0 : index
    %58 = vector.load %arg8[%c0_29, %c0_30] : memref<1x32xf32, #tpu.memory_space<vmem>>, vector<1x32xf32>
    %cst_31 = arith.constant dense<0.000000e+00> : vector<8x32xf32>
    %59 = tpu.matmul %56, %57, %cst_31 {dimension_numbers = #tpu.dot_dimension_numbers<[1], [0], [0], [1], [0, 0, 1, 1], [], []>} : vector<8x32xf32>, vector<32x32xf32>, vector<8x32xf32> -> vector<8x32xf32>
    %60 = vector.broadcast %58 : vector<1x32xf32> to vector<8x32xf32>
    %61 = arith.addf %59, %60 : vector<8x32xf32>
    %62 = arith.addf %61, %0 : vector<8x32xf32>
    %c0_32 = arith.constant 0 : index
    %c0_33 = arith.constant 0 : index
    %63 = vector.load %arg17[%c0_32, %c0_33] : memref<1x32xf32, #tpu.memory_space<vmem>>, vector<1x32xf32>
    %c0_34 = arith.constant 0 : index
    %c0_35 = arith.constant 0 : index
    %64 = vector.load %arg18[%c0_34, %c0_35] : memref<1x32xf32, #tpu.memory_space<vmem>>, vector<1x32xf32>
    %cst_36 = arith.constant dense<0.000000e+00> : vector<8xf32>
    %65 = vector.multi_reduction <add>, %62, %cst_36 [1] : vector<8x32xf32> to vector<8xf32>
    %66 = vector.shape_cast %65 : vector<8xf32> to vector<8x1xf32>
    %cst_37 = arith.constant 3.200000e+01 : f32
    %67 = vector.broadcast %cst_37 : f32 to vector<8x1xf32>
    %68 = arith.divf %66, %67 : vector<8x1xf32>
    %69 = vector.broadcast %68 : vector<8x1xf32> to vector<8x32xf32>
    %70 = arith.subf %62, %69 : vector<8x32xf32>
    %71 = arith.mulf %70, %70 : vector<8x32xf32>
    %cst_38 = arith.constant dense<0.000000e+00> : vector<8xf32>
    %72 = vector.multi_reduction <add>, %71, %cst_38 [1] : vector<8x32xf32> to vector<8xf32>
    %73 = vector.shape_cast %72 : vector<8xf32> to vector<8x1xf32>
    %cst_39 = arith.constant 3.200000e+01 : f32
    %74 = vector.broadcast %cst_39 : f32 to vector<8x1xf32>
    %75 = arith.divf %73, %74 : vector<8x1xf32>
    %76 = vector.broadcast %68 : vector<8x1xf32> to vector<8x32xf32>
    %77 = arith.subf %62, %76 : vector<8x32xf32>
    %cst_40 = arith.constant 9.99999974E-6 : f32
    %78 = vector.broadcast %cst_40 : f32 to vector<8x1xf32>
    %79 = arith.addf %75, %78 : vector<8x1xf32>
    %80 = math.rsqrt %79 : vector<8x1xf32>
    %81 = vector.broadcast %80 : vector<8x1xf32> to vector<8x32xf32>
    %82 = arith.mulf %77, %81 : vector<8x32xf32>
    %83 = vector.broadcast %63 : vector<1x32xf32> to vector<8x32xf32>
    %84 = arith.mulf %82, %83 : vector<8x32xf32>
    %85 = vector.broadcast %64 : vector<1x32xf32> to vector<8x32xf32>
    %86 = arith.addf %84, %85 : vector<8x32xf32>
    %c0_41 = arith.constant 0 : index
    %c0_42 = arith.constant 0 : index
    %87 = vector.load %arg9[%c0_41, %c0_42] : memref<32x96xf32, #tpu.memory_space<vmem>>, vector<32x96xf32>
    %c0_43 = arith.constant 0 : index
    %c0_44 = arith.constant 0 : index
    %88 = vector.load %arg10[%c0_43, %c0_44] : memref<1x96xf32, #tpu.memory_space<vmem>>, vector<1x96xf32>
    %cst_45 = arith.constant dense<0.000000e+00> : vector<8x96xf32>
    %89 = tpu.matmul %86, %87, %cst_45 {dimension_numbers = #tpu.dot_dimension_numbers<[1], [0], [0], [1], [0, 0, 1, 1], [], []>} : vector<8x32xf32>, vector<32x96xf32>, vector<8x96xf32> -> vector<8x96xf32>
    %90 = vector.broadcast %88 : vector<1x96xf32> to vector<8x96xf32>
    %91 = arith.addf %89, %90 : vector<8x96xf32>
    %92 = vector.extract_strided_slice %91 {offsets = [0, 0], sizes = [8, 32], strides = [1, 1]} : vector<8x96xf32> to vector<8x32xf32>
    %cst_46 = arith.constant 0.353553385 : f32
    %93 = vector.broadcast %cst_46 : f32 to vector<8x32xf32>
    %94 = arith.mulf %92, %93 : vector<8x32xf32>
    %95 = vector.shape_cast %94 : vector<8x32xf32> to vector<2x4x32xf32>
    %96 = vector.extract_strided_slice %91 {offsets = [0, 32], sizes = [8, 32], strides = [1, 1]} : vector<8x96xf32> to vector<8x32xf32>
    %97 = vector.shape_cast %96 : vector<8x32xf32> to vector<2x4x32xf32>
    %98 = vector.extract_strided_slice %91 {offsets = [0, 64], sizes = [8, 32], strides = [1, 1]} : vector<8x96xf32> to vector<8x32xf32>
    %99 = vector.shape_cast %98 : vector<8x32xf32> to vector<2x4x32xf32>
    %100 = vector.extract_strided_slice %95 {offsets = [0, 0, 0], sizes = [2, 4, 8], strides = [1, 1, 1]} : vector<2x4x32xf32> to vector<2x4x8xf32>
    %101 = vector.extract_strided_slice %97 {offsets = [0, 0, 0], sizes = [2, 4, 8], strides = [1, 1, 1]} : vector<2x4x32xf32> to vector<2x4x8xf32>
    "tpu.trace_start"() <{level = 10 : i32, message = "bqd,bkd->bqk"}> : () -> ()
    %cst_47 = arith.constant dense<0.000000e+00> : vector<2x4x4xf32>
    %102 = tpu.matmul %100, %101, %cst_47 {dimension_numbers = #tpu.dot_dimension_numbers<[2], [2], [1], [1], [0, 0, 0, 1, 1, 1], [0], [0]>} : vector<2x4x8xf32>, vector<2x4x8xf32>, vector<2x4x4xf32> -> vector<2x4x4xf32>
    "tpu.trace_stop"() : () -> ()
    %cst_48 = arith.constant dense<0xFF800000> : vector<2x4xf32>
    %103 = vector.multi_reduction <maximumf>, %102, %cst_48 [2] : vector<2x4x4xf32> to vector<2x4xf32>
    %104 = vector.shape_cast %103 : vector<2x4xf32> to vector<2x4x1xf32>
    %105 = vector.broadcast %104 : vector<2x4x1xf32> to vector<2x4x4xf32>
    %106 = arith.subf %102, %105 : vector<2x4x4xf32>
    %107 = math.exp %106 : vector<2x4x4xf32>
    %cst_49 = arith.constant dense<0.000000e+00> : vector<2x4xf32>
    %108 = vector.multi_reduction <add>, %107, %cst_49 [2] : vector<2x4x4xf32> to vector<2x4xf32>
    %109 = vector.shape_cast %108 : vector<2x4xf32> to vector<2x4x1xf32>
    %110 = vector.broadcast %109 : vector<2x4x1xf32> to vector<2x4x4xf32>
    %111 = arith.divf %107, %110 : vector<2x4x4xf32>
    %112 = vector.extract_strided_slice %99 {offsets = [0, 0, 0], sizes = [2, 4, 8], strides = [1, 1, 1]} : vector<2x4x32xf32> to vector<2x4x8xf32>
    "tpu.trace_start"() <{level = 10 : i32, message = "bqk,bkd->bqd"}> : () -> ()
    %cst_50 = arith.constant dense<0.000000e+00> : vector<2x4x8xf32>
    %113 = tpu.matmul %111, %112, %cst_50 {dimension_numbers = #tpu.dot_dimension_numbers<[2], [1], [1], [2], [0, 0, 0, 1, 1, 2], [0], [0]>} : vector<2x4x4xf32>, vector<2x4x8xf32>, vector<2x4x8xf32> -> vector<2x4x8xf32>
    "tpu.trace_stop"() : () -> ()
    %114 = vector.shape_cast %113 : vector<2x4x8xf32> to vector<8x8xf32>
    %c0_51 = arith.constant 0 : index
    %c0_52 = arith.constant 0 : index
    %115 = vector.load %arg24[%c0_51, %c0_52] : memref<8x32xf32, #tpu.memory_space<vmem>>, vector<8x8xf32>
    tpu.vector_store %arg24[%c0_51, %c0_52], %114 {strides = array<i32>} : memref<8x32xf32, #tpu.memory_space<vmem>>, vector<8x8xf32>,
    %116 = vector.extract_strided_slice %95 {offsets = [0, 0, 8], sizes = [2, 4, 8], strides = [1, 1, 1]} : vector<2x4x32xf32> to vector<2x4x8xf32>
    %117 = vector.extract_strided_slice %97 {offsets = [0, 0, 8], sizes = [2, 4, 8], strides = [1, 1, 1]} : vector<2x4x32xf32> to vector<2x4x8xf32>
    "tpu.trace_start"() <{level = 10 : i32, message = "bqd,bkd->bqk"}> : () -> ()
    %cst_53 = arith.constant dense<0.000000e+00> : vector<2x4x4xf32>
    %118 = tpu.matmul %116, %117, %cst_53 {dimension_numbers = #tpu.dot_dimension_numbers<[2], [2], [1], [1], [0, 0, 0, 1, 1, 1], [0], [0]>} : vector<2x4x8xf32>, vector<2x4x8xf32>, vector<2x4x4xf32> -> vector<2x4x4xf32>
    "tpu.trace_stop"() : () -> ()
    %cst_54 = arith.constant dense<0xFF800000> : vector<2x4xf32>
    %119 = vector.multi_reduction <maximumf>, %118, %cst_54 [2] : vector<2x4x4xf32> to vector<2x4xf32>
    %120 = vector.shape_cast %119 : vector<2x4xf32> to vector<2x4x1xf32>
    %121 = vector.broadcast %120 : vector<2x4x1xf32> to vector<2x4x4xf32>
    %122 = arith.subf %118, %121 : vector<2x4x4xf32>
    %123 = math.exp %122 : vector<2x4x4xf32>
    %cst_55 = arith.constant dense<0.000000e+00> : vector<2x4xf32>
    %124 = vector.multi_reduction <add>, %123, %cst_55 [2] : vector<2x4x4xf32> to vector<2x4xf32>
    %125 = vector.shape_cast %124 : vector<2x4xf32> to vector<2x4x1xf32>
    %126 = vector.broadcast %125 : vector<2x4x1xf32> to vector<2x4x4xf32>
    %127 = arith.divf %123, %126 : vector<2x4x4xf32>
    %128 = vector.extract_strided_slice %99 {offsets = [0, 0, 8], sizes = [2, 4, 8], strides = [1, 1, 1]} : vector<2x4x32xf32> to vector<2x4x8xf32>
    "tpu.trace_start"() <{level = 10 : i32, message = "bqk,bkd->bqd"}> : () -> ()
    %cst_56 = arith.constant dense<0.000000e+00> : vector<2x4x8xf32>
    %129 = tpu.matmul %127, %128, %cst_56 {dimension_numbers = #tpu.dot_dimension_numbers<[2], [1], [1], [2], [0, 0, 0, 1, 1, 2], [0], [0]>} : vector<2x4x4xf32>, vector<2x4x8xf32>, vector<2x4x8xf32> -> vector<2x4x8xf32>
    "tpu.trace_stop"() : () -> ()
    %130 = vector.shape_cast %129 : vector<2x4x8xf32> to vector<8x8xf32>
    %c0_57 = arith.constant 0 : index
    %c8 = arith.constant 8 : index
    %131 = vector.load %arg24[%c0_57, %c8] : memref<8x32xf32, #tpu.memory_space<vmem>>, vector<8x8xf32>
    tpu.vector_store %arg24[%c0_57, %c8], %130 {strides = array<i32>} : memref<8x32xf32, #tpu.memory_space<vmem>>, vector<8x8xf32>,
    %132 = vector.extract_strided_slice %95 {offsets = [0, 0, 16], sizes = [2, 4, 8], strides = [1, 1, 1]} : vector<2x4x32xf32> to vector<2x4x8xf32>
    %133 = vector.extract_strided_slice %97 {offsets = [0, 0, 16], sizes = [2, 4, 8], strides = [1, 1, 1]} : vector<2x4x32xf32> to vector<2x4x8xf32>
    "tpu.trace_start"() <{level = 10 : i32, message = "bqd,bkd->bqk"}> : () -> ()
    %cst_58 = arith.constant dense<0.000000e+00> : vector<2x4x4xf32>
    %134 = tpu.matmul %132, %133, %cst_58 {dimension_numbers = #tpu.dot_dimension_numbers<[2], [2], [1], [1], [0, 0, 0, 1, 1, 1], [0], [0]>} : vector<2x4x8xf32>, vector<2x4x8xf32>, vector<2x4x4xf32> -> vector<2x4x4xf32>
    "tpu.trace_stop"() : () -> ()
    %cst_59 = arith.constant dense<0xFF800000> : vector<2x4xf32>
    %135 = vector.multi_reduction <maximumf>, %134, %cst_59 [2] : vector<2x4x4xf32> to vector<2x4xf32>
    %136 = vector.shape_cast %135 : vector<2x4xf32> to vector<2x4x1xf32>
    %137 = vector.broadcast %136 : vector<2x4x1xf32> to vector<2x4x4xf32>
    %138 = arith.subf %134, %137 : vector<2x4x4xf32>
    %139 = math.exp %138 : vector<2x4x4xf32>
    %cst_60 = arith.constant dense<0.000000e+00> : vector<2x4xf32>
    %140 = vector.multi_reduction <add>, %139, %cst_60 [2] : vector<2x4x4xf32> to vector<2x4xf32>
    %141 = vector.shape_cast %140 : vector<2x4xf32> to vector<2x4x1xf32>
    %142 = vector.broadcast %141 : vector<2x4x1xf32> to vector<2x4x4xf32>
    %143 = arith.divf %139, %142 : vector<2x4x4xf32>
    %144 = vector.extract_strided_slice %99 {offsets = [0, 0, 16], sizes = [2, 4, 8], strides = [1, 1, 1]} : vector<2x4x32xf32> to vector<2x4x8xf32>
    "tpu.trace_start"() <{level = 10 : i32, message = "bqk,bkd->bqd"}> : () -> ()
    %cst_61 = arith.constant dense<0.000000e+00> : vector<2x4x8xf32>
    %145 = tpu.matmul %143, %144, %cst_61 {dimension_numbers = #tpu.dot_dimension_numbers<[2], [1], [1], [2], [0, 0, 0, 1, 1, 2], [0], [0]>} : vector<2x4x4xf32>, vector<2x4x8xf32>, vector<2x4x8xf32> -> vector<2x4x8xf32>
    "tpu.trace_stop"() : () -> ()
    %146 = vector.shape_cast %145 : vector<2x4x8xf32> to vector<8x8xf32>
    %c0_62 = arith.constant 0 : index
    %c16 = arith.constant 16 : index
    %147 = vector.load %arg24[%c0_62, %c16] : memref<8x32xf32, #tpu.memory_space<vmem>>, vector<8x8xf32>
    tpu.vector_store %arg24[%c0_62, %c16], %146 {strides = array<i32>} : memref<8x32xf32, #tpu.memory_space<vmem>>, vector<8x8xf32>,
    %148 = vector.extract_strided_slice %95 {offsets = [0, 0, 24], sizes = [2, 4, 8], strides = [1, 1, 1]} : vector<2x4x32xf32> to vector<2x4x8xf32>
    %149 = vector.extract_strided_slice %97 {offsets = [0, 0, 24], sizes = [2, 4, 8], strides = [1, 1, 1]} : vector<2x4x32xf32> to vector<2x4x8xf32>
    "tpu.trace_start"() <{level = 10 : i32, message = "bqd,bkd->bqk"}> : () -> ()
    %cst_63 = arith.constant dense<0.000000e+00> : vector<2x4x4xf32>
    %150 = tpu.matmul %148, %149, %cst_63 {dimension_numbers = #tpu.dot_dimension_numbers<[2], [2], [1], [1], [0, 0, 0, 1, 1, 1], [0], [0]>} : vector<2x4x8xf32>, vector<2x4x8xf32>, vector<2x4x4xf32> -> vector<2x4x4xf32>
    "tpu.trace_stop"() : () -> ()
    %cst_64 = arith.constant dense<0xFF800000> : vector<2x4xf32>
    %151 = vector.multi_reduction <maximumf>, %150, %cst_64 [2] : vector<2x4x4xf32> to vector<2x4xf32>
    %152 = vector.shape_cast %151 : vector<2x4xf32> to vector<2x4x1xf32>
    %153 = vector.broadcast %152 : vector<2x4x1xf32> to vector<2x4x4xf32>
    %154 = arith.subf %150, %153 : vector<2x4x4xf32>
    %155 = math.exp %154 : vector<2x4x4xf32>
    %cst_65 = arith.constant dense<0.000000e+00> : vector<2x4xf32>
    %156 = vector.multi_reduction <add>, %155, %cst_65 [2] : vector<2x4x4xf32> to vector<2x4xf32>
    %157 = vector.shape_cast %156 : vector<2x4xf32> to vector<2x4x1xf32>
    %158 = vector.broadcast %157 : vector<2x4x1xf32> to vector<2x4x4xf32>
    %159 = arith.divf %155, %158 : vector<2x4x4xf32>
    %160 = vector.extract_strided_slice %99 {offsets = [0, 0, 24], sizes = [2, 4, 8], strides = [1, 1, 1]} : vector<2x4x32xf32> to vector<2x4x8xf32>
    "tpu.trace_start"() <{level = 10 : i32, message = "bqk,bkd->bqd"}> : () -> ()
    %cst_66 = arith.constant dense<0.000000e+00> : vector<2x4x8xf32>
    %161 = tpu.matmul %159, %160, %cst_66 {dimension_numbers = #tpu.dot_dimension_numbers<[2], [1], [1], [2], [0, 0, 0, 1, 1, 2], [0], [0]>} : vector<2x4x4xf32>, vector<2x4x8xf32>, vector<2x4x8xf32> -> vector<2x4x8xf32>
    "tpu.trace_stop"() : () -> ()
    %162 = vector.shape_cast %161 : vector<2x4x8xf32> to vector<8x8xf32>
    %c0_67 = arith.constant 0 : index
    %c24 = arith.constant 24 : index
    %163 = vector.load %arg24[%c0_67, %c24] : memref<8x32xf32, #tpu.memory_space<vmem>>, vector<8x8xf32>
    tpu.vector_store %arg24[%c0_67, %c24], %162 {strides = array<i32>} : memref<8x32xf32, #tpu.memory_space<vmem>>, vector<8x8xf32>,
    %c0_68 = arith.constant 0 : index
    %c0_69 = arith.constant 0 : index
    %164 = vector.load %arg24[%c0_68, %c0_69] : memref<8x32xf32, #tpu.memory_space<vmem>>, vector<8x32xf32>
    %c0_70 = arith.constant 0 : index
    %c0_71 = arith.constant 0 : index
    %165 = vector.load %arg11[%c0_70, %c0_71] : memref<32x32xf32, #tpu.memory_space<vmem>>, vector<32x32xf32>
    %c0_72 = arith.constant 0 : index
    %c0_73 = arith.constant 0 : index
    %166 = vector.load %arg12[%c0_72, %c0_73] : memref<1x32xf32, #tpu.memory_space<vmem>>, vector<1x32xf32>
    %cst_74 = arith.constant dense<0.000000e+00> : vector<8x32xf32>
    %167 = tpu.matmul %164, %165, %cst_74 {dimension_numbers = #tpu.dot_dimension_numbers<[1], [0], [0], [1], [0, 0, 1, 1], [], []>} : vector<8x32xf32>, vector<32x32xf32>, vector<8x32xf32> -> vector<8x32xf32>
    %168 = vector.broadcast %166 : vector<1x32xf32> to vector<8x32xf32>
    %169 = arith.addf %167, %168 : vector<8x32xf32>
    %170 = arith.addf %169, %86 : vector<8x32xf32>
    %c0_75 = arith.constant 0 : index
    %c0_76 = arith.constant 0 : index
    %171 = vector.load %arg19[%c0_75, %c0_76] : memref<1x32xf32, #tpu.memory_space<vmem>>, vector<1x32xf32>
    %c0_77 = arith.constant 0 : index
    %c0_78 = arith.constant 0 : index
    %172 = vector.load %arg20[%c0_77, %c0_78] : memref<1x32xf32, #tpu.memory_space<vmem>>, vector<1x32xf32>
    %cst_79 = arith.constant dense<0.000000e+00> : vector<8xf32>
    %173 = vector.multi_reduction <add>, %170, %cst_79 [1] : vector<8x32xf32> to vector<8xf32>
    %174 = vector.shape_cast %173 : vector<8xf32> to vector<8x1xf32>
    %cst_80 = arith.constant 3.200000e+01 : f32
    %175 = vector.broadcast %cst_80 : f32 to vector<8x1xf32>
    %176 = arith.divf %174, %175 : vector<8x1xf32>
    %177 = vector.broadcast %176 : vector<8x1xf32> to vector<8x32xf32>
    %178 = arith.subf %170, %177 : vector<8x32xf32>
    %179 = arith.mulf %178, %178 : vector<8x32xf32>
    %cst_81 = arith.constant dense<0.000000e+00> : vector<8xf32>
    %180 = vector.multi_reduction <add>, %179, %cst_81 [1] : vector<8x32xf32> to vector<8xf32>
    %181 = vector.shape_cast %180 : vector<8xf32> to vector<8x1xf32>
    %cst_82 = arith.constant 3.200000e+01 : f32
    %182 = vector.broadcast %cst_82 : f32 to vector<8x1xf32>
    %183 = arith.divf %181, %182 : vector<8x1xf32>
    %184 = vector.broadcast %176 : vector<8x1xf32> to vector<8x32xf32>
    %185 = arith.subf %170, %184 : vector<8x32xf32>
    %cst_83 = arith.constant 9.99999974E-6 : f32
    %186 = vector.broadcast %cst_83 : f32 to vector<8x1xf32>
    %187 = arith.addf %183, %186 : vector<8x1xf32>
    %188 = math.rsqrt %187 : vector<8x1xf32>
    %189 = vector.broadcast %188 : vector<8x1xf32> to vector<8x32xf32>
    %190 = arith.mulf %185, %189 : vector<8x32xf32>
    %191 = vector.broadcast %171 : vector<1x32xf32> to vector<8x32xf32>
    %192 = arith.mulf %190, %191 : vector<8x32xf32>
    %193 = vector.broadcast %172 : vector<1x32xf32> to vector<8x32xf32>
    %194 = arith.addf %192, %193 : vector<8x32xf32>
    %c0_84 = arith.constant 0 : index
    %c0_85 = arith.constant 0 : index
    %195 = vector.load %arg13[%c0_84, %c0_85] : memref<32x64xf32, #tpu.memory_space<vmem>>, vector<32x64xf32>
    %c0_86 = arith.constant 0 : index
    %c0_87 = arith.constant 0 : index
    %196 = vector.load %arg14[%c0_86, %c0_87] : memref<1x64xf32, #tpu.memory_space<vmem>>, vector<1x64xf32>
    %cst_88 = arith.constant dense<0.000000e+00> : vector<8x64xf32>
    %197 = tpu.matmul %194, %195, %cst_88 {dimension_numbers = #tpu.dot_dimension_numbers<[1], [0], [0], [1], [0, 0, 1, 1], [], []>} : vector<8x32xf32>, vector<32x64xf32>, vector<8x64xf32> -> vector<8x64xf32>
    %198 = vector.broadcast %196 : vector<1x64xf32> to vector<8x64xf32>
    %199 = arith.addf %197, %198 : vector<8x64xf32>
    %cst_89 = arith.constant 0.000000e+00 : f32
    %200 = vector.broadcast %cst_89 : f32 to vector<8x64xf32>
    %201 = arith.maximumf %199, %200 : vector<8x64xf32>
    %c0_90 = arith.constant 0 : index
    %c0_91 = arith.constant 0 : index
    %202 = vector.load %arg15[%c0_90, %c0_91] : memref<64x32xf32, #tpu.memory_space<vmem>>, vector<64x32xf32>
    %c0_92 = arith.constant 0 : index
    %c0_93 = arith.constant 0 : index
    %203 = vector.load %arg16[%c0_92, %c0_93] : memref<1x32xf32, #tpu.memory_space<vmem>>, vector<1x32xf32>
    %cst_94 = arith.constant dense<0.000000e+00> : vector<8x32xf32>
    %204 = tpu.matmul %201, %202, %cst_94 {dimension_numbers = #tpu.dot_dimension_numbers<[1], [0], [0], [1], [0, 0, 1, 1], [], []>} : vector<8x64xf32>, vector<64x32xf32>, vector<8x32xf32> -> vector<8x32xf32>
    %205 = vector.broadcast %203 : vector<1x32xf32> to vector<8x32xf32>
    %206 = arith.addf %204, %205 : vector<8x32xf32>
    %207 = arith.addf %206, %194 : vector<8x32xf32>
    %c0_95 = arith.constant 0 : index
    %c0_96 = arith.constant 0 : index
    %208 = vector.load %arg21[%c0_95, %c0_96] : memref<1x32xf32, #tpu.memory_space<vmem>>, vector<1x32xf32>
    %c0_97 = arith.constant 0 : index
    %c0_98 = arith.constant 0 : index
    %209 = vector.load %arg22[%c0_97, %c0_98] : memref<1x32xf32, #tpu.memory_space<vmem>>, vector<1x32xf32>
    %cst_99 = arith.constant dense<0.000000e+00> : vector<8xf32>
    %210 = vector.multi_reduction <add>, %207, %cst_99 [1] : vector<8x32xf32> to vector<8xf32>
    %211 = vector.shape_cast %210 : vector<8xf32> to vector<8x1xf32>
    %cst_100 = arith.constant 3.200000e+01 : f32
    %212 = vector.broadcast %cst_100 : f32 to vector<8x1xf32>
    %213 = arith.divf %211, %212 : vector<8x1xf32>
    %214 = vector.broadcast %213 : vector<8x1xf32> to vector<8x32xf32>
    %215 = arith.subf %207, %214 : vector<8x32xf32>
    %216 = arith.mulf %215, %215 : vector<8x32xf32>
    %cst_101 = arith.constant dense<0.000000e+00> : vector<8xf32>
    %217 = vector.multi_reduction <add>, %216, %cst_101 [1] : vector<8x32xf32> to vector<8xf32>
    %218 = vector.shape_cast %217 : vector<8xf32> to vector<8x1xf32>
    %cst_102 = arith.constant 3.200000e+01 : f32
    %219 = vector.broadcast %cst_102 : f32 to vector<8x1xf32>
    %220 = arith.divf %218, %219 : vector<8x1xf32>
    %221 = vector.broadcast %213 : vector<8x1xf32> to vector<8x32xf32>
    %222 = arith.subf %207, %221 : vector<8x32xf32>
    %cst_103 = arith.constant 9.99999974E-6 : f32
    %223 = vector.broadcast %cst_103 : f32 to vector<8x1xf32>
    %224 = arith.addf %220, %223 : vector<8x1xf32>
    %225 = math.rsqrt %224 : vector<8x1xf32>
    %226 = vector.broadcast %225 : vector<8x1xf32> to vector<8x32xf32>
    %227 = arith.mulf %222, %226 : vector<8x32xf32>
    %228 = vector.broadcast %208 : vector<1x32xf32> to vector<8x32xf32>
    %229 = arith.mulf %227, %228 : vector<8x32xf32>
    %230 = vector.broadcast %209 : vector<1x32xf32> to vector<8x32xf32>
    %231 = arith.addf %229, %230 : vector<8x32xf32>
    %c0_104 = arith.constant 0 : index
    %c0_105 = arith.constant 0 : index
    %232 = vector.load %arg23[%c0_104, %c0_105] : memref<8x32xf32, #tpu.memory_space<vmem>>, vector<8x32xf32>
    tpu.vector_store %arg23[%c0_104, %c0_105], %231 {strides = array<i32>} : memref<8x32xf32, #tpu.memory_space<vmem>>, vector<8x32xf32>,
    return
  }
  func.func @transform_0(%arg0: i32) -> (i32, i32) {
    %c0_i32 = arith.constant 0 : i32
    %c0_i32_0 = arith.constant 0 : i32
    %c0_i32_1 = arith.constant 0 : i32
    return %c0_i32, %c0_i32_0 : i32, i32
  }
  func.func @transform_1(%arg0: i32) -> (i32, i32, i32) {
    %c0_i32 = arith.constant 0 : i32
    %c0_i32_0 = arith.constant 0 : i32
    %c0_i32_1 = arith.constant 0 : i32
    %c0_i32_2 = arith.constant 0 : i32
    return %c0_i32, %c0_i32_0, %c0_i32_1 : i32, i32, i32
  }
  func.func @transform_2(%arg0: i32) -> (i32, i32, i32) {
    %c0_i32 = arith.constant 0 : i32
    %c0_i32_0 = arith.constant 0 : i32
    %c0_i32_1 = arith.constant 0 : i32
    %c0_i32_2 = arith.constant 0 : i32
    return %c0_i32, %c0_i32_0, %c0_i32_1 : i32, i32, i32
  }
  func.func @transform_3(%arg0: i32) -> (i32, i32) {
    %c0_i32 = arith.constant 0 : i32
    %c0_i32_0 = arith.constant 0 : i32
    %c0_i32_1 = arith.constant 0 : i32
    return %c0_i32, %c0_i32_0 : i32, i32
  }
  func.func @transform_4(%arg0: i32) -> (i32, i32) {
    %c0_i32 = arith.constant 0 : i32
    %c0_i32_0 = arith.constant 0 : i32
    %c0_i32_1 = arith.constant 0 : i32
    return %c0_i32, %c0_i32_0 : i32, i32
  }
  func.func @transform_5(%arg0: i32) -> (i32, i32) {
    %c0_i32 = arith.constant 0 : i32
    %c0_i32_0 = arith.constant 0 : i32
    %c0_i32_1 = arith.constant 0 : i32
    return %c0_i32, %c0_i32_0 : i32, i32
  }
  func.func @transform_6(%arg0: i32) -> (i32, i32) {
    %c0_i32 = arith.constant 0 : i32
    %c0_i32_0 = arith.constant 0 : i32
    %c0_i32_1 = arith.constant 0 : i32
    return %c0_i32, %c0_i32_0 : i32, i32
  }
  func.func @transform_7(%arg0: i32) -> (i32, i32) {
    %c0_i32 = arith.constant 0 : i32
    %c0_i32_0 = arith.constant 0 : i32
    %c0_i32_1 = arith.constant 0 : i32
    return %c0_i32, %c0_i32_0 : i32, i32
  }
  func.func @transform_8(%arg0: i32) -> (i32, i32) {
    %c0_i32 = arith.constant 0 : i32
    %c0_i32_0 = arith.constant 0 : i32
    %c0_i32_1 = arith.constant 0 : i32
    return %c0_i32, %c0_i32_0 : i32, i32
  }
  func.func @transform_9(%arg0: i32) -> (i32, i32) {
    %c0_i32 = arith.constant 0 : i32
    %c0_i32_0 = arith.constant 0 : i32
    %c0_i32_1 = arith.constant 0 : i32
    return %c0_i32, %c0_i32_0 : i32, i32
  }
  func.func @transform_10(%arg0: i32) -> (i32, i32) {
    %c0_i32 = arith.constant 0 : i32
    %c0_i32_0 = arith.constant 0 : i32
    %c0_i32_1 = arith.constant 0 : i32
    return %c0_i32, %c0_i32_0 : i32, i32
  }
  func.func @transform_11(%arg0: i32) -> (i32, i32) {
    %c0_i32 = arith.constant 0 : i32
    %c0_i32_0 = arith.constant 0 : i32
    %c0_i32_1 = arith.constant 0 : i32
    return %c0_i32, %c0_i32_0 : i32, i32
  }
  func.func @transform_12(%arg0: i32) -> (i32, i32) {
    %c0_i32 = arith.constant 0 : i32
    %c0_i32_0 = arith.constant 0 : i32
    %c0_i32_1 = arith.constant 0 : i32
    return %c0_i32, %c0_i32_0 : i32, i32
  }
  func.func @transform_13(%arg0: i32) -> (i32, i32) {
    %c0_i32 = arith.constant 0 : i32
    %c0_i32_0 = arith.constant 0 : i32
    %c0_i32_1 = arith.constant 0 : i32
    return %c0_i32, %c0_i32_0 : i32, i32
  }
  func.func @transform_14(%arg0: i32) -> (i32, i32) {
    %c0_i32 = arith.constant 0 : i32
    %c0_i32_0 = arith.constant 0 : i32
    %c0_i32_1 = arith.constant 0 : i32
    return %c0_i32, %c0_i32_0 : i32, i32
  }
  func.func @transform_15(%arg0: i32) -> (i32, i32) {
    %c0_i32 = arith.constant 0 : i32
    %c0_i32_0 = arith.constant 0 : i32
    %c0_i32_1 = arith.constant 0 : i32
    return %c0_i32, %c0_i32_0 : i32, i32
  }
  func.func @transform_16(%arg0: i32) -> (i32, i32) {
    %c0_i32 = arith.constant 0 : i32
    %c0_i32_0 = arith.constant 0 : i32
    %c0_i32_1 = arith.constant 0 : i32
    return %c0_i32, %c0_i32_0 : i32, i32
  }
  func.func @transform_17(%arg0: i32) -> (i32, i32) {
    %c0_i32 = arith.constant 0 : i32
    %c0_i32_0 = arith.constant 0 : i32
    %c0_i32_1 = arith.constant 0 : i32
    return %c0_i32, %c0_i32_0 : i32, i32
  }
  func.func @transform_18(%arg0: i32) -> (i32, i32) {
    %c0_i32 = arith.constant 0 : i32
    %c0_i32_0 = arith.constant 0 : i32
    %c0_i32_1 = arith.constant 0 : i32
    return %c0_i32, %c0_i32_0 : i32, i32
  }
  func.func @transform_19(%arg0: i32) -> (i32, i32) {
    %c0_i32 = arith.constant 0 : i32
    %c0_i32_0 = arith.constant 0 : i32
    %c0_i32_1 = arith.constant 0 : i32
    return %c0_i32, %c0_i32_0 : i32, i32
  }
  func.func @transform_20(%arg0: i32) -> (i32, i32) {
    %c0_i32 = arith.constant 0 : i32
    %c0_i32_0 = arith.constant 0 : i32
    %c0_i32_1 = arith.constant 0 : i32
    return %c0_i32, %c0_i32_0 : i32, i32
  }
  func.func @transform_21(%arg0: i32) -> (i32, i32) {
    %c0_i32 = arith.constant 0 : i32
    %c0_i32_0 = arith.constant 0 : i32
    %c0_i32_1 = arith.constant 0 : i32
    return %c0_i32, %c0_i32_0 : i32, i32
  }
  func.func @transform_22(%arg0: i32) -> (i32, i32) {
    %c0_i32 = arith.constant 0 : i32
    %c0_i32_0 = arith.constant 0 : i32
    %c0_i32_1 = arith.constant 0 : i32
    return %c0_i32, %c0_i32_0 : i32, i32
  }
}

</mosaic_0001>

<bundles_post_ra>
// kernel: tpu_custom_call.1
= control target key start
LH: loop header
LB: loop body
LE: loop exit
PB: predicated region body
PF: predicated region fallthrough
CT: control target
= control target key end

     0   :  { %s4816_s0 = inlined_call_operand.hbm [shape: f32[8,32], index: 0, kind: input, shape index: {}]   ;;  %s4817_s1 = inlined_call_operand.vmem [shape: f32[8,8,32], index: 1, kind: input, shape index: {}]   ;;  %s4818_s2 = inlined_call_operand.hbm [shape: f32[8,8,32], index: 2, kind: input, shape index: {}]   ;;  %s4819_s3 = inlined_call_operand.vmem [shape: f32[32,32], index: 3, kind: input, shape index: {}]   ;;  %s4820_s4 = inlined_call_operand.hbm [shape: f32[32,96], index: 4, kind: input, shape index: {}]   ;;  %s4821_s5 = inlined_call_operand.vmem [shape: f32[1,96], index: 5, kind: input, shape index: {}]   ;;  %s4822_s6 = inlined_call_operand.hbm [shape: f32[32,32], index: 6, kind: input, shape index: {}]   ;;  %s4823_s7 = inlined_call_operand.vmem [shape: f32[1,32], index: 7, kind: input, shape index: {}]   ;;  %s4824_s8 = inlined_call_operand.hbm [shape: f32[32,96], index: 8, kind: input, shape index: {}]   ;;  %s4825_s9 = inlined_call_operand.vmem [shape: f32[1,96], index: 9, kind: input, shape index: {}]   ;;  %s4826_s10 = inlined_call_operand.hbm [shape: f32[32,32], index: 10, kind: input, shape index: {}]   ;;  %s4827_s11 = inlined_call_operand.vmem [shape: f32[1,32], index: 11, kind: input, shape index: {}]   ;;  %s4828_s12 = inlined_call_operand.hbm [shape: f32[32,64], index: 12, kind: input, shape index: {}]   ;;  %s4829_s13 = inlined_call_operand.vmem [shape: f32[1,64], index: 13, kind: input, shape index: {}]   ;;  %s4830_s14 = inlined_call_operand.vmem [shape: f32[64,32], index: 14, kind: input, shape index: {}]   ;;  %s4831_s15 = inlined_call_operand.vmem [shape: f32[1,32], index: 15, kind: input, shape index: {}]   ;;  %s4832_s16 = inlined_call_operand.vmem [shape: f32[1,32], index: 16, kind: input, shape index: {}]   ;;  %s4833_s17 = inlined_call_operand.vmem [shape: f32[1,32], index: 17, kind: input, shape index: {}]   ;;  %s4834_s18 = inlined_call_operand.vmem [shape: f32[1,32], index: 18, kind: input, shape index: {}]   ;;  %s4835_s19 = inlined_call_operand.vmem [shape: f32[1,32], index: 19, kind: input, shape index: {}]   ;;  %s4836_s20 = inlined_call_operand.vmem [shape: f32[1,32], index: 20, kind: input, shape index: {}]   ;;  %s4837_s21 = inlined_call_operand.vmem [shape: f32[1,32], index: 21, kind: input, shape index: {}]   ;;  %s4838_s22 = inlined_call_operand.hbm [shape: f32[8,32], index: 22, kind: output, shape index: {}]  }
   0x1   :  { %4846 = sst [smem:[#allocation21_spill]] %s4816_s0 }
   0x2   :  { %4847 = sst [smem:[#allocation22_spill]] %s4817_s1 }
   0x3   :  { %4848 = sst [smem:[#allocation23_spill]] %s4818_s2 }
   0x4   :  { %4849 = sst [smem:[#allocation24_spill]] %s4819_s3 }
   0x5   :  { %4850 = sst [smem:[#allocation25_spill]] %s4820_s4 }
   0x6   :  { %4851 = sst [smem:[#allocation26_spill]] %s4821_s5 }
   0x7   :  { %4852 = sst [smem:[#allocation27_spill]] %s4822_s6 }
   0x8   :  { %4853 = sst [smem:[#allocation28_spill]] %s4836_s20 }
   0x9   :  { %4854 = sst [smem:[#allocation29_spill]] %s4837_s21 }
   0xa   :  { %4855 = sst [smem:[#allocation30_spill]] %s4838_s22 }
   0xb   :  { %27 = vsyncpa [#allocation4], 0 }
   0xc   :  { %28 = vsyncpa [#allocation7], 0 }
   0xd   :  { %29 = vsyncpa [#allocation10], 0 }
   0xe   :  { %30 = vsyncpa [#allocation13], 0 }
   0xf   :  { %31 = vsyncpa [#allocation5], 0  ;;  %s4030_s3 = smov [#allocation6]   ;;  %s4856_s4 = sld [smem:[#allocation23_spill]] }
  0x10   :  { %s49_s28 = sshll.u32 %s4030_s3, 4  ;;  %s50_s28 = int_to_ptr.vmem [resolvable:$true] %s49_s28 }
  0x15   :  { %s3844_s0 = scalar_lea.hbm %s4856_s4, 1024 }
  0x16   :  { %p3845_p0 = scmp.ne.s32.totalorder %s4856_s4, %s3844_s0  ;;  %p3848_p1 = scmp.lt.u32.totalorder %s3844_s0, %s4856_s4 }
  0x18   :  { %p3850_p2 = pnand %p3848_p1, %p3845_p0 }
  0x1a   :  { %3853 = shalt.err (!%p3850_p2)
}
  0x1b   :  { %s3854_s6 = scalar_lea.vmem %s50_s28, 1024  ;;  %p3859_p4 = scmp.lt.s32.totalorder %s50_s28, %s50_s28 }
  0x1c   :  { %p3855_p3 = scmp.ne.s32.totalorder %s50_s28, %s3854_s6  ;;  %p3860_p5 = scmp.lt.s32.totalorder %s3854_s6, %s3854_s6 }
  0x1e   :  { %p3861_p6 = por %p3860_p5, %p3859_p4 }
  0x20   :  { %p3862_p7 = pnand %p3861_p6, %p3855_p3 }
  0x22   :  { %3865 = shalt.err (!%p3862_p7)
}
  0x23   :  { %s4031_s25 = smov 128   ;;  %s4032_s26 = smov 8  }
  0x24   :  { %55 = dma.hbm_to_vmem [thread:$0]  %s4856_s4, 1024, %s50_s28, [#allocation7], %s4031_s25, %s4031_s25, %s4032_s26  }
  0x25   :  { %s4033_s3 = smov [#allocation9]   ;;  %s4034_s30 = smov [#allocation12]  }
  0x26   :  { %s77_s29 = sshll.u32 %s4033_s3, 4  ;;  %s105_s0 = sshll.u32 %s4034_s30, 4  ;;  %s78_s29 = int_to_ptr.vmem [resolvable:$true] %s77_s29  ;;  %s106_s0 = int_to_ptr.vmem [resolvable:$true] %s105_s0 }
  0x27   :  { %s4857_s5 = sld [smem:[#allocation27_spill]] }
  0x2d   :  { %s3866_s24 = scalar_lea.hbm %s4857_s5, 512 }
  0x2e   :  { %p3867_p8 = scmp.ne.s32.totalorder %s4857_s5, %s3866_s24  ;;  %p3870_p9 = scmp.lt.u32.totalorder %s3866_s24, %s4857_s5 }
  0x30   :  { %p3872_p10 = pnand %p3870_p9, %p3867_p8 }
  0x32   :  { %3875 = shalt.err (!%p3872_p10)
}
  0x33   :  { %s3876_s28 = scalar_lea.vmem %s78_s29, 512  ;;  %p3881_p12 = scmp.lt.s32.totalorder %s78_s29, %s78_s29 }
  0x34   :  { %p3877_p11 = scmp.ne.s32.totalorder %s78_s29, %s3876_s28  ;;  %p3882_p13 = scmp.lt.s32.totalorder %s3876_s28, %s3876_s28 }
  0x36   :  { %p3883_p0 = por %p3882_p13, %p3881_p12 }
  0x38   :  { %p3884_p1 = pnand %p3883_p0, %p3877_p11 }
  0x3a   :  { %3887 = shalt.err (!%p3884_p1)
}
  0x3b   :  { %83 = dma.hbm_to_vmem [thread:$0]  %s4857_s5, 512, %s78_s29, [#allocation10], %s4031_s25, %s4031_s25, %s4032_s26  }
  0x3c   :  { %s3888_s21 = scalar_lea.hbm %s4826_s10, 512 }
  0x3d   :  { %p3889_p2 = scmp.ne.s32.totalorder %s4826_s10, %s3888_s21  ;;  %p3892_p3 = scmp.lt.u32.totalorder %s3888_s21, %s4826_s10 }
  0x3f   :  { %p3894_p4 = pnand %p3892_p3, %p3889_p2 }
  0x41   :  { %3897 = shalt.err (!%p3894_p4)
}
  0x42   :  { %s3898_s1 = scalar_lea.vmem %s106_s0, 512  ;;  %p3903_p6 = scmp.lt.s32.totalorder %s106_s0, %s106_s0 }
  0x43   :  { %p3899_p5 = scmp.ne.s32.totalorder %s106_s0, %s3898_s1  ;;  %p3904_p7 = scmp.lt.s32.totalorder %s3898_s1, %s3898_s1 }
  0x45   :  { %p3905_p8 = por %p3904_p7, %p3903_p6 }
  0x47   :  { %p3906_p9 = pnand %p3905_p8, %p3899_p5 }
  0x49   :  { %3909 = shalt.err (!%p3906_p9)
}
  0x4a   :  { %111 = dma.hbm_to_vmem [thread:$0]  %s4826_s10, 512, %s106_s0, [#allocation13], %s4031_s25, %s4031_s25, %s4032_s26  }
  0x4b   :  { %s4035_s24 = smov [#allocation3]   ;;  %s4036_s28 = smov [#allocation8]  }
  0x4c   :  { %s38_s6 = sshll.u32 %s4035_s24, 4  ;;  %s63_s4 = sshll.u32 %s4036_s28, 4  ;;  %s39_s6 = int_to_ptr.vmem [resolvable:$true] %s38_s6  ;;  %s64_s4 = int_to_ptr.vmem [resolvable:$true] %s63_s4 }
  0x4d   :  { %s4858_s20 = sld [smem:[#allocation21_spill]] }
  0x53   :  { %s3910_s21 = scalar_lea.hbm %s4858_s20, 128 }
  0x54   :  { %p3911_p10 = scmp.ne.s32.totalorder %s4858_s20, %s3910_s21  ;;  %p3914_p11 = scmp.lt.u32.totalorder %s3910_s21, %s4858_s20 }
  0x56   :  { %p3916_p12 = pnand %p3914_p11, %p3911_p10 }
  0x58   :  { %3919 = shalt.err (!%p3916_p12)
}
  0x59   :  { %s3920_s10 = scalar_lea.vmem %s39_s6, 128  ;;  %p3925_p0 = scmp.lt.s32.totalorder %s39_s6, %s39_s6 }
  0x5a   :  { %p3921_p13 = scmp.ne.s32.totalorder %s39_s6, %s3920_s10  ;;  %p3926_p1 = scmp.lt.s32.totalorder %s3920_s10, %s3920_s10 }
  0x5c   :  { %p3927_p2 = por %p3926_p1, %p3925_p0 }
  0x5e   :  { %p3928_p3 = pnand %p3927_p2, %p3921_p13 }
  0x60   :  { %3931 = shalt.err (!%p3928_p3)
}
  0x61   :  { %41 = dma.hbm_to_vmem [thread:$0]  %s4858_s20, 128, %s39_s6, [#allocation4]  }
  0x62   :  { %s4859_s24 = sld [smem:[#allocation25_spill]] }
  0x68   :  { %s3932_s28 = scalar_lea.hbm %s4859_s24, 512 }
  0x69   :  { %p3933_p4 = scmp.ne.s32.totalorder %s4859_s24, %s3932_s28  ;;  %p3936_p5 = scmp.lt.u32.totalorder %s3932_s28, %s4859_s24 }
  0x6b   :  { %p3938_p6 = pnand %p3936_p5, %p3933_p4 }
  0x6d   :  { %3941 = shalt.err (!%p3938_p6)
}
  0x6e   :  { %s3942_s3 = scalar_lea.vmem %s64_s4, 512  ;;  %p3947_p8 = scmp.lt.s32.totalorder %s64_s4, %s64_s4 }
  0x6f   :  { %p3943_p7 = scmp.ne.s32.totalorder %s64_s4, %s3942_s3  ;;  %p3948_p9 = scmp.lt.s32.totalorder %s3942_s3, %s3942_s3 }
  0x71   :  { %p3949_p10 = por %p3948_p9, %p3947_p8 }
  0x73   :  { %p3950_p11 = pnand %p3949_p10, %p3943_p7 }
  0x75   :  { %3953 = shalt.err (!%p3950_p11)
}
  0x76   :  { %69 = dma.hbm_to_vmem [thread:$0]  %s4859_s24, 512, %s64_s4, [#allocation7], %s4031_s25, %s4031_s25, %s4032_s26  }
  0x77   :  { %s4037_s30 = smov [#allocation11]   ;;  %s4038_s10 = smov [#allocation14]  }
  0x78   :  { %s91_s23 = sshll.u32 %s4037_s30, 4  ;;  %s119_s0 = sshll.u32 %s4038_s10, 4  ;;  %s92_s23 = int_to_ptr.vmem [resolvable:$true] %s91_s23  ;;  %s120_s0 = int_to_ptr.vmem [resolvable:$true] %s119_s0 }
  0x79   :  { %s3954_s5 = scalar_lea.hbm %s4824_s8, 512 }
  0x7a   :  { %p3955_p12 = scmp.ne.s32.totalorder %s4824_s8, %s3954_s5  ;;  %p3958_p13 = scmp.lt.u32.totalorder %s3954_s5, %s4824_s8 }
  0x7c   :  { %p3960_p0 = pnand %p3958_p13, %p3955_p12 }
  0x7e   :  { %3963 = shalt.err (!%p3960_p0)
}
  0x7f   :  { %s3964_s4 = scalar_lea.vmem %s92_s23, 512  ;;  %p3969_p2 = scmp.lt.s32.totalorder %s92_s23, %s92_s23 }
  0x80   :  { %p3965_p1 = scmp.ne.s32.totalorder %s92_s23, %s3964_s4  ;;  %p3970_p3 = scmp.lt.s32.totalorder %s3964_s4, %s3964_s4 }
  0x82   :  { %p3971_p4 = por %p3970_p3, %p3969_p2 }
  0x84   :  { %p3972_p5 = pnand %p3971_p4, %p3965_p1 }
  0x86   :  { %3975 = shalt.err (!%p3972_p5)
}
  0x87   :  { %97 = dma.hbm_to_vmem [thread:$0]  %s4824_s8, 512, %s92_s23, [#allocation10], %s4031_s25, %s4031_s25, %s4032_s26  }
  0x88   :  { %s3976_s20 = scalar_lea.hbm %s4828_s12, 512 }
  0x89   :  { %p3977_p6 = scmp.ne.s32.totalorder %s4828_s12, %s3976_s20  ;;  %p3980_p7 = scmp.lt.u32.totalorder %s3976_s20, %s4828_s12 }
  0x8b   :  { %p3982_p8 = pnand %p3980_p7, %p3977_p6 }
  0x8d   :  { %3985 = shalt.err (!%p3982_p8)
}
  0x8e   :  { %s3986_s5 = scalar_lea.vmem %s120_s0, 512  ;;  %p3991_p10 = scmp.lt.s32.totalorder %s120_s0, %s120_s0 }
  0x8f   :  { %p3987_p9 = scmp.ne.s32.totalorder %s120_s0, %s3986_s5  ;;  %p3992_p11 = scmp.lt.s32.totalorder %s3986_s5, %s3986_s5 }
  0x91   :  { %p3993_p12 = por %p3992_p11, %p3991_p10 }
  0x93   :  { %p3994_p13 = pnand %p3993_p12, %p3987_p9 }
  0x95   :  { %3997 = shalt.err (!%p3994_p13)
}
  0x96   :  { %125 = dma.hbm_to_vmem [thread:$0]  %s4828_s12, 512, %s120_s0, [#allocation13], %s4031_s25, %s4031_s25, %s4032_s26  }
  0x97   :  { %4020 = dma.done.wait [#allocation4], 128  }
  0x98   :  { %4021 = vsyncadd [#allocation4], 4294967168 }
  0x99   :  { %4022 = dma.done.wait [#allocation7], 1536  }
  0x9a   :  { %4023 = vsyncadd [#allocation7], 4294965760 }
  0x9b   :  { %4024 = dma.done.wait [#allocation10], 1024  }
  0x9c   :  { %4025 = vsyncadd [#allocation10], 4294966272 }
  0x9d   :  { %4026 = dma.done.wait [#allocation13], 1024  }
  0x9e   :  { %4027 = vsyncadd [#allocation13], 4294966272  ;;  %v4039_v0 = vmov 0.0|0.0   ;;  %vm4040_vm0 = vmmov 0   ;;  %v4041_v1 = vmov 0.0   ;;  %v170_v2 = vld [vmem:[#allocation8] sm:$0xff]  ;;  %v569_v52 = vlaneseq }
  0x9f   :  { %3638 = vmatprep.subr.bf16.mxu1 %v4039_v0  ;;  %3421 = vmatprep.mubr.msk.f32.mxu1 %vm4040_vm0, %v4041_v1  ;;  %v171_v3 = vld [vmem:[#allocation8 + $0x8] sm:$0xff]  ;;  %v172_v4 = vld [vmem:[#allocation8 + $0x10] sm:$0xff]  ;;  %v173_v7 = vld [vmem:[#allocation8 + $0x18] sm:$0xff]  ;;  %s4042_s12 = smov 96   ;;  %vm181_vm1 = vcmask 261120   ;;  %s4860_s28 = sld [smem:[#allocation22_spill]] }
  0xa0   :  { %v3737_v5 = vpack.i.bf16 %v171_v3, %v170_v2  ;;  %v3639_v6 = vpack.c.bf16 %v171_v3, %v170_v2  ;;  %v3742_v8 = vpack.i.bf16 %v173_v7, %v172_v4  ;;  %v3642_v9 = vpack.c.bf16 %v173_v7, %v172_v4  ;;  %v165_v10 = vld [vmem:[#allocation3] sm:$0xff]  ;;  %s4861_s21 = sld [smem:[#allocation26_spill]]  ;;  %s4043_s4 = smov 64   ;;  %v412_v13 = vld [vmem:[#allocation6] sm:$0xff]  ;;  %v413_v43 = vld [vmem:[#allocation6 + $0x8] sm:$0xff] }
  0xa1   :  { %3452 = vmatprep.mubr.msk.f32.mxu0 %vm181_vm1, %v412_v13  ;;  %s4862_s3 = sld [smem:[#allocation24_spill]]  ;;  %v414_v44 = vld [vmem:[#allocation6 + $0x10] sm:$0xff]  ;;  %v415_v45 = vld [vmem:[#allocation6 + $0x18] sm:$0xff]  ;;  %v416_v46 = vld [vmem:[#allocation6 + $0x20] sm:$0xff]  ;;  %v4044_v50 = vmov 1966171168  }
  0xa2   :  { %3738 = vrot.lane.b32.xlu0 %v3737_v5, %s4042_s12  ;;  %3640 = vmatpush3.bf16.msra.mxu1 %v3639_v6  ;;  %v417_v47 = vld [vmem:[#allocation6 + $0x28] sm:$0xff]  ;;  %v418_v48 = vld [vmem:[#allocation6 + $0x30] sm:$0xff]  ;;  %v419_v49 = vld [vmem:[#allocation6 + $0x38] sm:$0xff]  ;;  %v567_v51 = vunpack.c.l.s4 %v4044_v50  ;;  %v570_v54 = vshrl.u32 %v569_v52, 7  ;;  %vm1324_vm2 = vcmask 1041409   ;;  %vm1327_vm3 = vcmask 1042434  }
  0xa3   :  { %3641 = vmatprep.subr.bf16.mxu1 %v4039_v0  ;;  %3748 = vrot.lane.b32.xlu1 %v3737_v5, %s4043_s4  ;;  %vm1330_vm4 = vcmask 1043459   ;;  %vm1333_vm5 = vcmask 1044484   ;;  %vm1336_vm6 = vcmask 1045509   ;;  %vm1339_vm7 = vcmask 1046534   ;;  %s4050_s25 = smov 48   ;;  %s4051_s0 = smov 72  }
  0xa4   :  { %v568_v53 = vunpack.c.0.s8 %v567_v51  ;;  %vm1342_vm8 = vcmask 1047559   ;;  %vm1538_vm9 = vcmask 64512   ;;  %vm1689_vm10 = vcmask 27648   ;;  %s4052_s2 = smov 104   ;;  %s4053_s22 = smov 40  }
  0xa5   :  { %v256_v11 = vld [vmem:[%s4860_s28] sm:$0xff]  ;;  %v257_v25 = vld [vmem:[%s4860_s28 + $0x8] sm:$0xff]  ;;  %v258_v28 = vld [vmem:[%s4860_s28 + $0x10] sm:$0xff]  ;;  %vm1718_vm11 = vcmask 1043456   ;;  %vm1714_vm12 = vcmask 31744   ;;  %vm2211_vm13 = vcmask 130112  }
  0xa6   :  { %3743 = vrot.lane.b32.xlu0 %v3742_v8, %s4042_s12  ;;  %3643 = vmatpush3.bf16.msra.mxu1 %v3642_v9  ;;  %v4288_v12 = vld [vmem:[%s4861_s21] ss:$0 sm:$0xff]  ;;  %v259_v31 = vld [vmem:[%s4860_s28 + $0x18] sm:$0xff]  ;;  %v261_v37 = vld [vmem:[%s4860_s28 + $0x28] sm:$0xff]  ;;  %v4350_v55 = vsub.s32 %v568_v53, %v570_v54  ;;  %s4054_s21 = smov 16   ;;  %vm2551_vm14 = vcmask 195712  }
  0xa7   :  { %3753 = vrot.lane.b32.xlu1 %v3742_v8, %s4043_s4  ;;  %v166_v21 = vld [vmem:[%s4862_s3] sm:$0xff]  ;;  %v167_v22 = vld [vmem:[%s4862_s3 + $0x8] sm:$0xff]  ;;  %v168_v26 = vld [vmem:[%s4862_s3 + $0x10] sm:$0xff]  ;;  %vm2891_vm15 = vcmask 261312   ;;  %s4864_s24 = sld [smem:[#allocation29_spill]]  ;;  %s4056_s27 = smov [#allocation15]  }
  0xa8   :  { %v3660_v24 = vpack.c.bf16 %v167_v22, %v166_v21  ;;  %v169_v27 = vld [vmem:[%s4862_s3 + $0x18] sm:$0xff]  ;;  %v260_v34 = vld [vmem:[%s4860_s28 + $0x20] sm:$0xff]  ;;  %v262_v40 = vld [vmem:[%s4860_s28 + $0x30] sm:$0xff] }
  0xa9   :  { %3422 = vmatmul.mubr.msk.f32.vlgmr.msra.gmra.mrb[0].mxu1 %vm181_vm1, %v165_v10  ;;  %v3664_v30 = vpack.c.bf16 %v169_v27, %v168_v26  ;;  %v263_v42 = vld [vmem:[%s4860_s28 + $0x38] sm:$0xff] }
  0xaa   :  { %3432 = vmatprep.mubr.msk.f32.mxu1 %vm181_vm1, %v256_v11  ;;  %280 = vrot.lane.b32.xlu0 %v4288_v12, %s4042_s12 }
  0xae   :  { %432 = vrot.lane.b32.xlu0 %v4288_v12, %s4043_s4 }
 0x114   :  { %v3739_v14 = vpop.permute.xlu0 %3738 }
 0x115   :  { %v3741_v15 = vunpack.i.h.bf16 %v3739_v14  ;;  %v3740_v16 = vunpack.i.l.bf16 %v3739_v14  ;;  %v3749_v29 = vpop.permute.xlu1 %3748 }
 0x116   :  { %v3751_v32 = vunpack.i.h.bf16 %v3749_v29  ;;  %v3750_v33 = vunpack.i.l.bf16 %v3749_v29 }
 0x117   :  { %v3644_v17 = vpack.c.bf16 %v3741_v15, %v3740_v16 }
 0x118   :  { %v3744_v18 = vpop.permute.xlu0 %3743  ;;  %v3652_v35 = vpack.c.bf16 %v3751_v32, %v3750_v33 }
 0x119   :  { %v3746_v19 = vunpack.i.h.bf16 %v3744_v18  ;;  %v3745_v20 = vunpack.i.l.bf16 %v3744_v18  ;;  %3645 = vmatprep.subr.bf16.mxu1 %v3644_v17  ;;  %v3754_v36 = vpop.permute.xlu1 %3753 }
 0x11a   :  { %3647 = vmatpush3.bf16.msra.mxu1 %v3644_v17  ;;  %v3756_v38 = vunpack.i.h.bf16 %v3754_v36  ;;  %v3755_v39 = vunpack.i.l.bf16 %v3754_v36  ;;  %3653 = vmatprep.subr.bf16.mxu0 %v3652_v35 }
 0x11b   :  { %v3648_v23 = vpack.c.bf16 %v3746_v19, %v3745_v20  ;;  %3655 = vmatpush3.bf16.msra.mxu0 %v3652_v35  ;;  %v4371_v19 = vsub.s32 0, %v570_v54 }
 0x11c   :  { %v3656_v41 = vpack.c.bf16 %v3756_v38, %v3755_v39  ;;  %v281_v18 = vpop.permute.xlu0 %280 }
 0x11d   :  { %3649 = vmatprep.subr.bf16.mxu1 %v3648_v23 }
 0x11e   :  { %3651 = vmatpush3.bf16.msra.mxu1 %v3648_v23  ;;  %3657 = vmatprep.subr.bf16.mxu0 %v3656_v41 }
 0x11f   :  { %3661 = vmatprep.subr.bf16.mxu1 %v3660_v24  ;;  %3659 = vmatpush3.bf16.msra.mxu0 %v3656_v41 }
 0x120   :  { %3668 = vmatprep.subr.bf16.mxu0 %v4039_v0 }
 0x121   :  { %3433 = vmatmul.mubr.msk.f32.vlgmr.msra.gmra.mrb[2].mxu1 %vm181_vm1, %v257_v25 }
 0x122   :  { %3435 = vmatprep.mubr.msk.f32.mxu1 %vm181_vm1, %v258_v28  ;;  %3663 = vmatpush3.bf16.msra.mxu1 %v3660_v24 }
 0x123   :  { %3665 = vmatprep.subr.bf16.mxu1 %v3664_v30  ;;  %3453 = vmatmul.mubr.msk.f32.vlgmr.msra.gmra.mrb[0].mxu0 %vm181_vm1, %v413_v43 }
 0x124   :  { %3455 = vmatprep.mubr.msk.f32.mxu0 %vm181_vm1, %v414_v44  ;;  %3670 = vmatpush3.bf16.msra.mxu0 %v3660_v24 }
 0x125   :  { %3436 = vmatmul.mubr.msk.f32.gmra.mrb[4].mxu1 %vm181_vm1, %v259_v31  ;;  %3671 = vmatprep.subr.bf16.mxu0 %v4039_v0 }
 0x126   :  { %3438 = vmatprep.mubr.msk.f32.mxu1 %vm181_vm1, %v260_v34  ;;  %3667 = vmatpush3.bf16.msra.mxu1 %v3664_v30 }
 0x127   :  { %3680 = vmatprep.subr.bf16.mxu1 %v4039_v0  ;;  %3456 = vmatmul.mubr.msk.f32.gmra.mrb[2].mxu0 %vm181_vm1, %v415_v45 }
 0x128   :  { %3458 = vmatprep.mubr.msk.f32.mxu0 %vm181_vm1, %v416_v46  ;;  %3673 = vmatpush3.bf16.msra.mxu0 %v3664_v30 }
 0x129   :  { %3439 = vmatmul.mubr.msk.f32.gmra.mrb[6].mxu1 %vm181_vm1, %v261_v37  ;;  %3674 = vmatprep.subr.bf16.mxu0 %v4039_v0 }
 0x12a   :  { %3441 = vmatprep.mubr.msk.f32.mxu1 %vm181_vm1, %v262_v40 }
 0x12b   :  { %3459 = vmatmul.mubr.msk.f32.gmra.mrb[4].mxu0 %vm181_vm1, %v417_v47 }
 0x12c   :  { %3461 = vmatprep.mubr.msk.f32.mxu0 %vm181_vm1, %v418_v48 }
 0x12d   :  { %3442 = vmatmul.mubr.msk.f32.gmra.mrb[8].mxu1 %vm181_vm1, %v263_v42 }
 0x12f   :  { %3462 = vmatmul.mubr.msk.f32.gmra.mrb[6].mxu0 %vm181_vm1, %v419_v49 }
 0x130   :  { %3492 = vmatprep.mubr.msk.f32.mxu0 %vm4040_vm0, %v4041_v1 }
 0x17c   :  { %v251_v56 = vpop.f32.mrb[0].mxu1 }
 0x17d   :  { %v252_v57 = vadd.f32 %v4288_v12, %v251_v56  ;;  %v3423_v58 = vpop.f32.mrb[1].mxu1 }
 0x17f   :  { %792 = vrot.lane.b32.xlu1 %v252_v57, %s4042_s12  ;;  %v1206_v59 = vrot.slane %v252_v57, %v4350_v55  ;;  %v1199_v60 = vcombine.high %v252_v57, %v252_v57  ;;  %v255_v10 = vmul.f32 0.35355338, %v252_v57 }
 0x181   :  { %v1222_v61 = vrot.slane %v1206_v59, %v4350_v55  ;;  %v1214_v62 = vcombine.high %v1206_v59, %v1206_v59  ;;  %v1213_v63 = vrot.slane %v1199_v60, %v4350_v55  ;;  %v572_v11 = vrot.slane %v255_v10, %v4350_v55 }
 0x182   :  { %v565_v12 = vcombine.high %v255_v10, %v255_v10 }
 0x183   :  { %1248 = vrot.lane.b32.xlu1 %v1222_v61, %s4043_s4  ;;  %v1244_v2 = vcombine.high %v1222_v61, %v1222_v61  ;;  %v1236_v3 = vrot.slane %v1214_v62, %v4350_v55  ;;  %v1215_v5 = vcombine.high %v1213_v63, %v1213_v63  ;;  %v1229_v6 = vrot.slane %v1213_v63, %v4350_v55 }
 0x184   :  { %v580_v13 = vcombine.high %v572_v11, %v572_v11  ;;  %v579_v16 = vrot.slane %v565_v12, %v4350_v55  ;;  %v588_v20 = vrot.slane %v572_v11, %v4350_v55  ;;  %v1307_v11 = vld [vmem:[#allocation9 + $0x18] sm:$0xff] }
 0x185   :  { %1252 = vrot.lane.b32.xlu0 %v1244_v2, %s4043_s4  ;;  %v1246_v4 = vcombine.high %v1236_v3, %v1236_v3  ;;  %v1243_v7 = vrot.slane %v1215_v5, %v4350_v55  ;;  %v1245_v8 = vcombine.high %v1229_v6, %v1229_v6 }
 0x186   :  { %v602_v15 = vrot.slane %v580_v13, %v4350_v55  ;;  %v581_v26 = vcombine.high %v579_v16, %v579_v16  ;;  %v617_v28 = vrot.slane %v588_v20, %v4371_v19  ;;  %v610_v29 = vcombine.high %v588_v20, %v588_v20 }
 0x187   :  { %1250 = vrot.lane.b32.xlu1 %v1236_v3, %s4043_s4  ;;  %v1247_v9 = vcombine.high %v1243_v7, %v1243_v7  ;;  %v595_v39 = vrot.slane %v579_v16, %v4350_v55 }
 0x188   :  { %v621_v23 = vrot.slane %v602_v15, %v4371_v19  ;;  %v612_v25 = vcombine.high %v602_v15, %v602_v15  ;;  %v609_v36 = vrot.slane %v581_v26, %v4350_v55  ;;  %v625_v38 = vrot.slane %v610_v29, %v4371_v19 }
 0x189   :  { %1254 = vrot.lane.b32.xlu0 %v1246_v4, %s4043_s4  ;;  %v633_v48 = vrot.slane %v595_v39, %v4371_v19  ;;  %v611_v49 = vcombine.high %v595_v39, %v595_v39 }
 0x18a   :  { %v629_v34 = vrot.slane %v612_v25, %v4371_v19  ;;  %v637_v44 = vrot.slane %v609_v36, %v4371_v19  ;;  %v613_v46 = vcombine.high %v609_v36, %v609_v36 }
 0x18b   :  { %1256 = vrot.lane.b32.xlu1 %v1229_v6, %s4043_s4  ;;  %v641_v58 = vrot.slane %v611_v49, %v4371_v19 }
 0x18c   :  { %v645_v54 = vrot.slane %v613_v46, %v4371_v19 }
 0x18d   :  { %1258 = vrot.lane.b32.xlu0 %v1243_v7, %s4043_s4  ;;  %v1304_v7 = vld [vmem:[#allocation9] sm:$0xff] }
 0x18f   :  { %1260 = vrot.lane.b32.xlu1 %v1245_v8, %s4043_s4  ;;  %v1305_v8 = vld [vmem:[#allocation9 + $0x8] sm:$0xff] }
 0x191   :  { %1262 = vrot.lane.b32.xlu0 %v1247_v9, %s4043_s4  ;;  %v1306_v9 = vld [vmem:[#allocation9 + $0x10] sm:$0xff] }
 0x192   :  { %v3678_v12 = vpack.c.bf16 %v1307_v11, %v1306_v9 }
 0x1f1   :  { %v793_v14 = vpop.permute.xlu1 %792 }
 0x1f2   :  { %v795_v17 = vmul.f32 %v793_v14, %v255_v10  ;;  %v3675_v10 = vpack.c.bf16 %v1305_v8, %v1304_v7 }
 0x1f4   :  { %v3434_v21 = vpop.f32.mrb[2].mxu1  ;;  %3493 = vmatmul.mubr.msk.f32.vlgmr.msra.gmra.mrb[8].mxu0 %vm181_vm1, %v795_v17 }
 0x1f5   :  { %v379_v22 = vadd.f32 %v3434_v21, %v281_v18  ;;  %v373_v24 = vpop.f32.mrb[3].mxu1  ;;  %3503 = vmatprep.mubr.msk.f32.mxu0 %vm4040_vm0, %v4041_v1  ;;  %3676 = vmatpush3.bf16.msra.mxu0 %v3675_v10 }
 0x1f6   :  { %v374_v27 = vadd.f32 %v373_v24, %v281_v18  ;;  %v3454_v59 = vpop.f32.mrb[0].mxu0  ;;  %3677 = vmatprep.subr.bf16.mxu0 %v4039_v0 }
 0x1f7   :  { %v655_v30 = vmul.f32 %v621_v23, %v379_v22  ;;  %v525_v61 = vpop.f32.mrb[1].mxu0 }
 0x1f8   :  { %v654_v31 = vmul.f32 %v617_v28, %v374_v27  ;;  %v3437_v32 = vpop.f32.mrb[4].mxu1  ;;  %v4423_v27 = vpop.permute.xlu0 %432 }
 0x1f9   :  { %v389_v33 = vadd.f32 %v3437_v32, %v281_v18  ;;  %v383_v35 = vpop.f32.mrb[5].mxu1  ;;  %3679 = vmatpush3.bf16.msra.mxu0 %v3678_v12  ;;  %v4430_v32 = vadd.f32 %v3454_v59, %v4423_v27  ;;  %v4435_v36 = vadd.f32 %v525_v61, %v4423_v27 }
 0x1fa   :  { %v384_v37 = vadd.f32 %v383_v35, %v281_v18  ;;  %3472 = vmatprep.mubr.msk.f32.mxu1 %vm181_vm1, %v654_v31  ;;  %v3457_v63 = vpop.f32.mrb[2].mxu0  ;;  %3517 = vmatprep.subr.mxu0 %v4041_v1 }
 0x1fb   :  { %v657_v40 = vmul.f32 %v629_v34, %v389_v33  ;;  %3473 = vmatmul.mubr.msk.f32.vlgmr.msra.gmra.mrb[10].mxu1 %vm181_vm1, %v655_v30  ;;  %v4394_v2 = vpop.f32.mrb[3].mxu0 }
 0x1fc   :  { %v656_v41 = vmul.f32 %v625_v38, %v384_v37  ;;  %v3440_v42 = vpop.f32.mrb[6].mxu1 }
 0x1fd   :  { %v399_v43 = vadd.f32 %v3440_v42, %v281_v18  ;;  %v393_v45 = vpop.f32.mrb[7].mxu1 }
 0x1fe   :  { %v394_v47 = vadd.f32 %v393_v45, %v281_v18  ;;  %3475 = vmatprep.mubr.msk.f32.mxu1 %vm181_vm1, %v656_v41  ;;  %v4399_v3 = vpop.f32.mrb[4].mxu0 }
 0x1ff   :  { %v659_v50 = vmul.f32 %v637_v44, %v399_v43  ;;  %3476 = vmatmul.mubr.msk.f32.gmra.mrb[12].mxu1 %vm181_vm1, %v657_v40  ;;  %v4401_v4 = vpop.f32.mrb[5].mxu0  ;;  %v4439_v40 = vadd.f32 %v3457_v63, %v4423_v27 }
 0x200   :  { %v658_v51 = vmul.f32 %v633_v48, %v394_v47  ;;  %v3443_v52 = vpop.f32.mrb[8].mxu1 }
 0x201   :  { %v409_v53 = vadd.f32 %v3443_v52, %v281_v18  ;;  %v403_v56 = vpop.f32.mrb[9].mxu1 }
 0x202   :  { %v404_v57 = vadd.f32 %v403_v56, %v281_v18  ;;  %3478 = vmatprep.mubr.msk.f32.mxu1 %vm181_vm1, %v658_v51  ;;  %v4403_v5 = vpop.f32.mrb[6].mxu0 }
 0x203   :  { %v661_v60 = vmul.f32 %v645_v54, %v409_v53  ;;  %3479 = vmatmul.mubr.msk.f32.gmra.mrb[14].mxu1 %vm181_vm1, %v659_v50  ;;  %v4405_v6 = vpop.f32.mrb[7].mxu0 }
 0x204   :  { %v660_v62 = vmul.f32 %v641_v58, %v404_v57 }
 0x206   :  { %3481 = vmatprep.mubr.msk.f32.mxu1 %vm181_vm1, %v660_v62 }
 0x207   :  { %3482 = vmatmul.mubr.msk.f32.gmra.mrb[16].mxu1 %vm181_vm1, %v661_v60 }
 0x208   :  { %3514 = vmatprep.mubr.msk.f32.mxu1 %vm4040_vm0, %v4041_v1 }
 0x2c7   :  { %v865_v13 = vpop.f32.mrb[8].mxu0 }
 0x2c8   :  { %v3494_v14 = vpop.f32.mrb[9].mxu0  ;;  %v926_v15 = vcombine.high %v865_v13, %v865_v13  ;;  %v933_v17 = vrot.slane %v865_v13, %v4350_v55 }
 0x2ca   :  { %v4419_v24 = vrot.slane %v926_v15, %v4350_v55  ;;  %v941_v28 = vcombine.high %v933_v17, %v933_v17  ;;  %v949_v37 = vrot.slane %v933_v17, %v4350_v55 }
 0x2cc   :  { %v942_v41 = vcombine.high %v4419_v24, %v4419_v24  ;;  %v963_v45 = vrot.slane %v941_v28, %v4350_v55  ;;  %v971_v57 = vcombine.high %v949_v37, %v949_v37 }
 0x2ce   :  { %v4409_v16 = vpop.f32.mrb[10].mxu1  ;;  %v4453_v59 = vrot.slane %v942_v41, %v4350_v55  ;;  %v973_v14 = vcombine.high %v963_v45, %v963_v45 }
 0x2cf   :  { %v876_v18 = vsel %vm181_vm1, %v4409_v16, -inf  ;;  %v4414_v20 = vpop.f32.mrb[11].mxu1 }
 0x2d0   :  { %v877_v21 = vrot.slane %v876_v18, 4  ;;  %v869_v22 = vsel %vm181_vm1, %v4414_v20, -inf }
 0x2d1   :  { %v870_v23 = vrot.slane %v869_v22, 4 }
 0x2d2   :  { %v878_v25 = vmax.f32 %v876_v18, %v877_v21  ;;  %v4421_v26 = vpop.f32.mrb[12].mxu1 }
 0x2d3   :  { %v871_v29 = vmax.f32 %v869_v22, %v870_v23  ;;  %v890_v30 = vsel %vm181_vm1, %v4421_v26, -inf  ;;  %v4427_v31 = vpop.f32.mrb[13].mxu1 }
 0x2d4   :  { %v879_v33 = vrot.slane %v878_v25, 2  ;;  %v891_v34 = vrot.slane %v890_v30, 4  ;;  %v883_v35 = vsel %vm181_vm1, %v4427_v31, -inf }
 0x2d5   :  { %v872_v38 = vrot.slane %v871_v29, 2  ;;  %v884_v39 = vrot.slane %v883_v35, 4 }
 0x2d6   :  { %v880_v42 = vmax.f32 %v878_v25, %v879_v33  ;;  %v892_v43 = vmax.f32 %v890_v30, %v891_v34  ;;  %v4443_v44 = vpop.f32.mrb[14].mxu1 }
 0x2d7   :  { %v873_v46 = vmax.f32 %v871_v29, %v872_v38  ;;  %v885_v47 = vmax.f32 %v883_v35, %v884_v39  ;;  %v904_v48 = vsel %vm181_vm1, %v4443_v44, -inf  ;;  %v4448_v49 = vpop.f32.mrb[15].mxu1 }
 0x2d8   :  { %v881_v50 = vrot.slane %v880_v42, 1  ;;  %v893_v51 = vrot.slane %v892_v43, 2  ;;  %v905_v52 = vrot.slane %v904_v48, 4  ;;  %v897_v53 = vsel %vm181_vm1, %v4448_v49, -inf }
 0x2d9   :  { %v874_v54 = vrot.slane %v873_v46, 1  ;;  %v886_v56 = vrot.slane %v885_v47, 2  ;;  %v898_v58 = vrot.slane %v897_v53, 4 }
 0x2da   :  { %v882_v60 = vmax.f32 %v880_v42, %v881_v50  ;;  %v894_v61 = vmax.f32 %v892_v43, %v893_v51  ;;  %v906_v62 = vmax.f32 %v904_v48, %v905_v52  ;;  %v4455_v63 = vpop.f32.mrb[16].mxu1 }
 0x2db   :  { %v875_v7 = vmax.f32 %v873_v46, %v874_v54  ;;  %v887_v8 = vmax.f32 %v885_v47, %v886_v56  ;;  %v899_v9 = vmax.f32 %v897_v53, %v898_v58  ;;  %v918_v10 = vsel %vm181_vm1, %v4455_v63, -inf  ;;  %v4459_v11 = vpop.f32.mrb[17].mxu1 }
 0x2dc   :  { %v984_v12 = vmax.f32 %v882_v60, %v963_v45  ;;  %v895_v13 = vrot.slane %v894_v61, 1  ;;  %v907_v15 = vrot.slane %v906_v62, 2  ;;  %v919_v22 = vrot.slane %v918_v10, 4 }
 0x2dd   :  { %v983_v17 = vmax.f32 %v875_v7, %v949_v37  ;;  %v888_v18 = vrot.slane %v887_v8, 1  ;;  %v900_v21 = vrot.slane %v899_v9, 2  ;;  %v956_v56 = vrot.slane %v4419_v24, %v4350_v55 }
 0x2de   :  { %v998_v23 = vrot.slane %v984_v12, %v4371_v19  ;;  %v1048_v25 = vsub.f32 %v963_v45, %v984_v12  ;;  %v896_v28 = vmax.f32 %v894_v61, %v895_v13  ;;  %v908_v29 = vmax.f32 %v906_v62, %v907_v15  ;;  %v1249_v13 = vpop.permute.xlu1 %1248 }
 0x2df   :  { %v994_v30 = vrot.slane %v983_v17, %v4371_v19  ;;  %v1047_v33 = vsub.f32 %v949_v37, %v983_v17  ;;  %v889_v34 = vmax.f32 %v887_v8, %v888_v18  ;;  %v901_v35 = vmax.f32 %v899_v9, %v900_v21 }
 0x2e0   :  { %v1024_v38 = vsub.f32 %v4409_v16, %v998_v23  ;;  %v1057_v39 = vmul.f32 1.442695, %v1048_v25  ;;  %v986_v41 = vmax.f32 %v896_v28, %v973_v14  ;;  %v909_v42 = vrot.slane %v908_v29, 1 }
 0x2e1   :  { %v1023_v43 = vsub.f32 %v4414_v20, %v994_v30  ;;  %v1055_v46 = vmul.f32 1.442695, %v1047_v33  ;;  %v985_v47 = vmax.f32 %v889_v34, %v971_v57  ;;  %v902_v48 = vrot.slane %v901_v35, 1 }
 0x2e2   :  { %v1033_v50 = vmul.f32 1.442695, %v1024_v38  ;;  %3757 = vpow2.f32 %v1057_v39  ;;  %v1006_v45 = vrot.slane %v986_v41, %v4371_v19  ;;  %v1050_v51 = vsub.f32 %v973_v14, %v986_v41  ;;  %v1251_v39 = vpop.permute.xlu1 %1250 }
 0x2e3   :  { %v1031_v52 = vmul.f32 1.442695, %v1023_v43  ;;  %3759 = vpow2.f32 %v1055_v46  ;;  %v1002_v37 = vrot.slane %v985_v47, %v4371_v19  ;;  %v1049_v53 = vsub.f32 %v971_v57, %v985_v47 }
 0x2e4   :  { %3761 = vpow2.f32 %v1033_v50  ;;  %v1026_v16 = vsub.f32 %v4421_v26, %v1006_v45  ;;  %v910_v54 = vmax.f32 %v908_v29, %v909_v42  ;;  %v911_v20 = vsel %vm181_vm1, %v4459_v11, -inf }
 0x2e5   :  { %3763 = vpow2.f32 %v1031_v52  ;;  %v1025_v58 = vsub.f32 %v4427_v31, %v1002_v37  ;;  %v903_v60 = vmax.f32 %v901_v35, %v902_v48  ;;  %v1061_v62 = vmul.f32 1.442695, %v1050_v51 }
 0x2e6   :  { %v1037_v61 = vmul.f32 1.442695, %v1026_v16  ;;  %v988_v7 = vmax.f32 %v910_v54, %v4453_v59  ;;  %v920_v8 = vmax.f32 %v918_v10, %v919_v22  ;;  %v1059_v9 = vmul.f32 1.442695, %v1049_v53 }
 0x2e7   :  { %v1035_v57 = vmul.f32 1.442695, %v1025_v58  ;;  %v987_v12 = vmax.f32 %v903_v60, %v956_v56  ;;  %v912_v26 = vrot.slane %v911_v20, 4  ;;  %v4479_v18 = vadd.f32 %v4394_v2, %v4423_v27 }
 0x2e8   :  { %3765 = vpow2.f32 %v1037_v61  ;;  %v1014_v14 = vrot.slane %v988_v7, %v4371_v19  ;;  %v1052_v15 = vsub.f32 %v4453_v59, %v988_v7  ;;  %v921_v55 = vrot.slane %v920_v8, 2 }
 0x2e9   :  { %3767 = vpow2.f32 %v1035_v57  ;;  %v1010_v24 = vrot.slane %v987_v12, %v4371_v19  ;;  %v1051_v31 = vsub.f32 %v956_v56, %v987_v12  ;;  %v913_v17 = vmax.f32 %v911_v20, %v912_v26 }
 0x2ea   :  { %v1028_v10 = vsub.f32 %v4443_v44, %v1014_v14  ;;  %v1065_v21 = vmul.f32 1.442695, %v1052_v15  ;;  %v922_v22 = vmax.f32 %v920_v8, %v921_v55  ;;  %3769 = vpow2.f32 %v1061_v62 }
 0x2eb   :  { %v1027_v23 = vsub.f32 %v4448_v49, %v1010_v24  ;;  %v1063_v25 = vmul.f32 1.442695, %v1051_v31  ;;  %v914_v28 = vrot.slane %v913_v17, 2  ;;  %v4487_v30 = vadd.f32 %v4399_v3, %v4423_v27 }
 0x2ec   :  { %v4483_v29 = vpop.eup %3757  ;;  %3771 = vpow2.f32 %v1059_v9  ;;  %v1041_v33 = vmul.f32 1.442695, %v1028_v10  ;;  %v923_v34 = vrot.slane %v922_v22, 1  ;;  %v4493_v44 = vadd.f32 %v4401_v4, %v4423_v27 }
 0x2ed   :  { %v4489_v2 = vpop.eup %3759  ;;  %3773 = vpow2.f32 %v1065_v21  ;;  %v1039_v35 = vmul.f32 1.442695, %v1027_v23  ;;  %v4495_v49 = vcombine.high %v956_v56, %v956_v56  ;;  %v4499_v3 = vcombine.high %v4453_v59, %v4453_v59 }
 0x2ee   :  { %v3762_v38 = vpop.eup %3761  ;;  %3775 = vpow2.f32 %v1063_v25  ;;  %v924_v41 = vmax.f32 %v922_v22, %v923_v34  ;;  %v4501_v42 = vmax.f32 %v913_v17, %v914_v28  ;;  %v4506_v47 = vmul.f32 %v4483_v29, %v1251_v39 }
 0x2ef   :  { %v3764_v43 = vpop.eup %3763  ;;  %v1078_v46 = vsel %vm181_vm1, %v3762_v38, 0.0  ;;  %v1136_v4 = vmul.f32 %v3762_v38, %v4430_v32  ;;  %3777 = vpow2.f32 %v1041_v33  ;;  %v4515_v37 = vmul.f32 %v4489_v2, %v1249_v13 }
 0x2f0   :  { %v1079_v48 = vrot.slane %v1078_v46, 4  ;;  %v1071_v50 = vsel %vm181_vm1, %v3764_v43, 0.0  ;;  %v1135_v45 = vmul.f32 %v3764_v43, %v4435_v36  ;;  %v4511_v51 = vmax.f32 %v924_v41, %v4499_v3 }
 0x2f1   :  { %v1150_v59 = vsel %vm181_vm1, %v1136_v4, 0.0  ;;  %v1072_v52 = vrot.slane %v1071_v50, 4  ;;  %3779 = vpow2.f32 %v1039_v35  ;;  %v916_v20 = vrot.slane %v4501_v42, 1 }
 0x2f2   :  { %v3766_v32 = vpop.eup %3765  ;;  %v1080_v53 = vadd.f32 %v1079_v48, %v1078_v46  ;;  %v1151_v16 = vrot.slane %v1150_v59, 4  ;;  %v1143_v54 = vsel %vm181_vm1, %v1135_v45, 0.0 }
 0x2f3   :  { %v3768_v56 = vpop.eup %3767  ;;  %v1073_v58 = vadd.f32 %v1072_v52, %v1071_v50  ;;  %v1144_v36 = vrot.slane %v1143_v54, 4  ;;  %v1092_v60 = vsel %vm181_vm1, %v3766_v32, 0.0  ;;  %v1138_v61 = vmul.f32 %v3766_v32, %v4439_v40 }
 0x2f4   :  { %v1081_v62 = vrot.slane %v1080_v53, 2  ;;  %v1152_v7 = vadd.f32 %v1151_v16, %v1150_v59  ;;  %v1093_v8 = vrot.slane %v1092_v60, 4  ;;  %v1085_v57 = vsel %vm181_vm1, %v3768_v56, 0.0  ;;  %v4522_v9 = vpop.eup %3769 }
 0x2f5   :  { %v1074_v12 = vrot.slane %v1073_v58, 2  ;;  %v1145_v26 = vadd.f32 %v1144_v36, %v1143_v54  ;;  %v1164_v13 = vsel %vm181_vm1, %v1138_v61, 0.0  ;;  %v1086_v14 = vrot.slane %v1085_v57, 4  ;;  %v1253_v36 = vpop.permute.xlu0 %1252 }
 0x2f6   :  { %v3772_v15 = vpop.eup %3771  ;;  %v1082_v55 = vadd.f32 %v1081_v62, %v1080_v53  ;;  %v1153_v24 = vrot.slane %v1152_v7, 2  ;;  %v1094_v31 = vadd.f32 %v1093_v8, %v1092_v60  ;;  %v1165_v17 = vrot.slane %v1164_v13, 4 }
 0x2f7   :  { %v4525_v10 = vpop.eup %3773  ;;  %v1075_v40 = vadd.f32 %v1074_v12, %v1073_v58  ;;  %v1146_v21 = vrot.slane %v1145_v26, 2  ;;  %v1087_v22 = vadd.f32 %v1086_v14, %v1085_v57  ;;  %v1137_v23 = vmul.f32 %v3768_v56, %v4479_v18 }
 0x2f8   :  { %v4528_v25 = vpop.eup %3775  ;;  %v1083_v28 = vrot.slane %v1082_v55, 1  ;;  %v1154_v33 = vadd.f32 %v1153_v24, %v1152_v7  ;;  %v1095_v34 = vrot.slane %v1094_v31, 2  ;;  %v1166_v35 = vadd.f32 %v1165_v17, %v1164_v13 }
 0x2f9   :  { %v3778_v38 = vpop.eup %3777  ;;  %v1076_v39 = vrot.slane %v1075_v40, 1  ;;  %v1147_v41 = vadd.f32 %v1146_v21, %v1145_v26  ;;  %v1088_v43 = vrot.slane %v1087_v22, 2  ;;  %v1157_v46 = vsel %vm181_vm1, %v1137_v23, 0.0 }
 0x2fa   :  { %v1084_v4 = vadd.f32 %v1083_v28, %v1082_v55  ;;  %v1155_v48 = vrot.slane %v1154_v33, 1  ;;  %v1096_v50 = vadd.f32 %v1095_v34, %v1094_v31  ;;  %v1167_v45 = vrot.slane %v1166_v35, 2 }
 0x2fb   :  { %v3780_v59 = vpop.eup %3779  ;;  %v1077_v52 = vadd.f32 %v1076_v39, %v1075_v40  ;;  %v1148_v32 = vrot.slane %v1147_v41, 1  ;;  %v1089_v18 = vadd.f32 %v1088_v43, %v1087_v22  ;;  %v1158_v53 = vrot.slane %v1157_v46, 4 }
 0x2fc   :  { %v1128_v16 = vadd.f32 %v4483_v29, %v1084_v4  ;;  %v1156_v54 = vadd.f32 %v1155_v48, %v1154_v33  ;;  %v1097_v56 = vrot.slane %v1096_v50, 1  ;;  %v917_v58 = vmax.f32 %v4501_v42, %v916_v20 }
 0x2fd   :  { %v1127_v60 = vadd.f32 %v4489_v2, %v1077_v52  ;;  %v1149_v61 = vadd.f32 %v1148_v32, %v1147_v41  ;;  %v1090_v62 = vrot.slane %v1089_v18, 1  ;;  %v1159_v7 = vadd.f32 %v1158_v53, %v1157_v46 }
 0x2fe   :  { %v1281_v8 = vadd.f32 %v4506_v47, %v1156_v54  ;;  %3781 = vrcp.f32 %v1128_v16  ;;  %v1098_v57 = vadd.f32 %v1097_v56, %v1096_v50  ;;  %v1274_v12 = vmul.f32 %v3772_v15, %v1253_v36 }
 0x2ff   :  { %v4536_v26 = vadd.f32 %v4515_v37, %v1149_v61  ;;  %v1168_v13 = vadd.f32 %v1167_v45, %v1166_v35  ;;  %v1091_v29 = vadd.f32 %v1090_v62, %v1089_v18  ;;  %v1160_v14 = vrot.slane %v1159_v7, 2  ;;  %v1257_v61 = vpop.permute.xlu1 %1256 }
 0x300   :  { %3783 = vrcp.f32 %v1127_v60  ;;  %v1130_v42 = vadd.f32 %v4522_v9, %v1098_v57  ;;  %v1106_v20 = vsel %vm181_vm1, %v3778_v38, 0.0  ;;  %v1140_v2 = vmul.f32 %v3778_v38, %v4487_v30 }
 0x301   :  { %v1129_v55 = vadd.f32 %v3772_v15, %v1091_v29  ;;  %v1161_v24 = vadd.f32 %v1160_v14, %v1159_v7  ;;  %v1107_v31 = vrot.slane %v1106_v20, 4  ;;  %v1099_v47 = vsel %vm181_vm1, %v3780_v59, 0.0  ;;  %v1255_v15 = vpop.permute.xlu0 %1254 }
 0x302   :  { %3785 = vrcp.f32 %v1130_v42  ;;  %v1178_v17 = vsel %vm181_vm1, %v1140_v2, 0.0  ;;  %v1100_v37 = vrot.slane %v1099_v47, 4  ;;  %v1139_v40 = vmul.f32 %v3780_v59, %v4493_v44 }
 0x303   :  { %v1162_v21 = vrot.slane %v1161_v24, 1  ;;  %3787 = vrcp.f32 %v1129_v55  ;;  %v1108_v22 = vadd.f32 %v1107_v31, %v1106_v20  ;;  %v1179_v23 = vrot.slane %v1178_v17, 4 }
 0x304   :  { %v1169_v28 = vrot.slane %v1168_v13, 1  ;;  %v1101_v33 = vadd.f32 %v1100_v37, %v1099_v47  ;;  %v1171_v34 = vsel %vm181_vm1, %v1139_v40, 0.0  ;;  %v1022_v30 = vrot.slane %v4511_v51, %v4371_v19 }
 0x305   :  { %v1163_v35 = vadd.f32 %v1162_v21, %v1161_v24  ;;  %v1109_v38 = vrot.slane %v1108_v22, 2  ;;  %v1180_v39 = vadd.f32 %v1179_v23, %v1178_v17  ;;  %v1172_v41 = vrot.slane %v1171_v34, 4  ;;  %v1259_v62 = vpop.permute.xlu0 %1258 }
 0x306   :  { %v1102_v43 = vrot.slane %v1101_v33, 2  ;;  %v1030_v46 = vsub.f32 %v4455_v63, %v1022_v30  ;;  %v1054_v44 = vsub.f32 %v4499_v3, %v4511_v51  ;;  %v989_v4 = vmax.f32 %v917_v58, %v4495_v49 }
 0x307   :  { %v1282_v48 = vadd.f32 %v1274_v12, %v1163_v35  ;;  %v1110_v50 = vadd.f32 %v1109_v38, %v1108_v22  ;;  %v1181_v45 = vrot.slane %v1180_v39, 2  ;;  %v1173_v59 = vadd.f32 %v1172_v41, %v1171_v34 }
 0x308   :  { %v3782_v52 = vpop.eup %3781  ;;  %v1170_v32 = vadd.f32 %v1169_v28, %v1168_v13  ;;  %v1103_v18 = vadd.f32 %v1102_v43, %v1101_v33  ;;  %v1045_v53 = vmul.f32 1.442695, %v1030_v46  ;;  %v1018_v16 = vrot.slane %v989_v4, %v4371_v19 }
 0x309   :  { %v1291_v54 = vmul.f32 %v3782_v52, %v1281_v8  ;;  %v1111_v56 = vrot.slane %v1110_v50, 1  ;;  %v1182_v63 = vadd.f32 %v1181_v45, %v1180_v39  ;;  %v1174_v36 = vrot.slane %v1173_v59, 2 }
 0x30a   :  { %v3784_v60 = vpop.eup %3783  ;;  %v1104_v3 = vrot.slane %v1103_v18, 1  ;;  %3789 = vpow2.f32 %v1045_v53  ;;  %v1029_v51 = vsub.f32 %v4459_v11, %v1018_v16  ;;  %v1053_v58 = vsub.f32 %v4495_v49, %v989_v4 }
 0x30b   :  { %v1275_v7 = vmul.f32 %v4522_v9, %v1255_v15  ;;  %v1112_v57 = vadd.f32 %v1111_v56, %v1110_v50  ;;  %v1183_v12 = vrot.slane %v1182_v63, 1  ;;  %v1175_v13 = vadd.f32 %v1174_v36, %v1173_v59 }
 0x30c   :  { %v3786_v19 = vpop.eup %3785  ;;  %v1105_v29 = vadd.f32 %v1104_v3, %v1103_v18  ;;  %v1276_v8 = vmul.f32 %v4528_v25, %v1257_v61  ;;  %v1043_v14 = vmul.f32 1.442695, %v1029_v51  ;;  %v1277_v42 = vmul.f32 %v4525_v10, %v1259_v62  ;;  %v1263_v62 = vpop.permute.xlu0 %1262 }
 0x30d   :  { %v3788_v20 = vpop.eup %3787  ;;  %v1132_v2 = vadd.f32 %v4525_v10, %v1112_v57  ;;  %v1176_v11 = vrot.slane %v1175_v13, 1  ;;  %v1184_v55 = vadd.f32 %v1183_v12, %v1182_v63  ;;  %v1283_v49 = vadd.f32 %v1275_v7, %v1170_v32 }
 0x30e   :  { %v1131_v24 = vadd.f32 %v4528_v25, %v1105_v29  ;;  %3791 = vpow2.f32 %v1043_v14  ;;  %v1289_v9 = vmul.f32 %v3784_v60, %v4536_v26  ;;  %v1293_v31 = vmul.f32 %v3788_v20, %v1282_v48 }
 0x30f   :  { %3793 = vrcp.f32 %v1132_v2  ;;  %v1177_v47 = vadd.f32 %v1176_v11, %v1175_v13  ;;  %v1285_v17 = vadd.f32 %v1277_v42, %v1184_v55  ;;  %v1295_v37 = vmul.f32 %v3786_v19, %v1283_v49 }
 0x310   :  { %3795 = vrcp.f32 %v1131_v24  ;;  %v1069_v40 = vmul.f32 1.442695, %v1054_v44  ;;  %v1323_v21 = vrot.slane %v1291_v54, 7  ;;  %v1326_v22 = vrot.slane %v1293_v31, 6  ;;  %v1261_v24 = vpop.permute.xlu1 %1260 }
 0x311   :  { %v1284_v23 = vadd.f32 %v1276_v8, %v1177_v47  ;;  %v1329_v28 = vrot.slane %v1295_v37, 5  ;;  %v561_v25 = vadd.f32 %v4403_v5, %v4423_v27  ;;  %v1067_v35 = vmul.f32 1.442695, %v1053_v58 }
 0x312   :  { %v1325_v10 = vsel %vm1324_vm2, %v1323_v21, %v1289_v9  ;;  %3797 = vpow2.f32 %v1069_v40  ;;  %v556_v39 = vadd.f32 %v4405_v6, %v4423_v27 }
 0x313   :  { %v1328_v33 = vsel %vm1327_vm3, %v1326_v22, %v1325_v10  ;;  %3799 = vpow2.f32 %v1067_v35 }
 0x314   :  { %v3790_v26 = vpop.eup %3789  ;;  %v1331_v34 = vsel %vm1330_vm4, %v1329_v28, %v1328_v33  ;;  %v3258_v33 = vld [vmem:[%s4823_s7] ss:$0 sm:$0xff] }
 0x315   :  { %v1120_v30 = vsel %vm181_vm1, %v3790_v26, 0.0  ;;  %v1142_v15 = vmul.f32 %v3790_v26, %v561_v25 }
 0x316   :  { %v1121_v38 = vrot.slane %v1120_v30, 4 }
 0x317   :  { %v1192_v41 = vsel %vm181_vm1, %v1142_v15, 0.0  ;;  %v3843_v15 = vld [vmem:[#allocation3] sm:$0xff] }
 0x318   :  { %v3792_v43 = vpop.eup %3791  ;;  %v1122_v46 = vadd.f32 %v1121_v38, %v1120_v30  ;;  %v1193_v44 = vrot.slane %v1192_v41, 4 }
 0x319   :  { %v3794_v4 = vpop.eup %3793  ;;  %v1113_v5 = vsel %vm181_vm1, %v3792_v43, 0.0  ;;  %v1141_v48 = vmul.f32 %v3792_v43, %v556_v39 }
 0x31a   :  { %v3796_v50 = vpop.eup %3795  ;;  %v1123_v45 = vrot.slane %v1122_v46, 2  ;;  %v1194_v59 = vadd.f32 %v1193_v44, %v1192_v41  ;;  %v1114_v52 = vrot.slane %v1113_v5, 4  ;;  %v1299_v32 = vmul.f32 %v3794_v4, %v1285_v17  ;;  %v1447_v4 = vld [vmem:[#allocation11] sm:$0xff] }
 0x31b   :  { %v1185_v18 = vsel %vm181_vm1, %v1141_v48, 0.0  ;;  %v1297_v53 = vmul.f32 %v3796_v50, %v1284_v23  ;;  %v1449_v50 = vld [vmem:[#allocation11 + $0x10] sm:$0xff] }
 0x31c   :  { %v1124_v6 = vadd.f32 %v1123_v45, %v1122_v46  ;;  %v1115_v27 = vadd.f32 %v1114_v52, %v1113_v5  ;;  %v1186_v16 = vrot.slane %v1185_v18, 4  ;;  %v1195_v54 = vrot.slane %v1194_v59, 2  ;;  %v3798_v63 = vpop.eup %3797  ;;  %v1448_v5 = vld [vmem:[#allocation11 + $0x8] sm:$0xff]  ;;  %v1450_v45 = vld [vmem:[#allocation11 + $0x18] sm:$0xff] }
 0x31d   :  { %v1332_v56 = vrot.slane %v1297_v53, 4  ;;  %v1335_v61 = vrot.slane %v1299_v32, 3  ;;  %v1279_v19 = vmul.f32 %v3798_v63, %v1263_v62  ;;  %v3800_v2 = vpop.eup %3799  ;;  %v3681_v48 = vpack.c.bf16 %v1448_v5, %v1447_v4 }
 0x31e   :  { %v1125_v36 = vrot.slane %v1124_v6, 1  ;;  %v1116_v60 = vrot.slane %v1115_v27, 2  ;;  %v1187_v3 = vadd.f32 %v1186_v16, %v1185_v18  ;;  %v1196_v51 = vadd.f32 %v1195_v54, %v1194_v59  ;;  %v3261_v16 = vld [vmem:[%s4833_s17] ss:$0 sm:$0xff]  ;;  %s4047_s17 = smov 56  }
 0x31f   :  { %v1334_v58 = vsel %vm1333_vm5, %v1332_v56, %v1331_v34  ;;  %v1278_v47 = vmul.f32 %v3800_v2, %v1261_v24  ;;  %3682 = vmatpush3.bf16.msra.mxu1 %v3681_v48  ;;  %v3684_v59 = vpack.c.bf16 %v1450_v45, %v1449_v50 }
 0x320   :  { %v1126_v7 = vadd.f32 %v1125_v36, %v1124_v6  ;;  %v1117_v57 = vadd.f32 %v1116_v60, %v1115_v27  ;;  %v1188_v12 = vrot.slane %v1187_v3, 2  ;;  %v1197_v13 = vrot.slane %v1196_v51, 1  ;;  %3683 = vmatprep.subr.bf16.mxu1 %v4039_v0  ;;  %v3260_v6 = vld [vmem:[%s4832_s16] ss:$0 sm:$0xff]  ;;  %s4046_s16 = smov 120  }
 0x321   :  { %v1337_v29 = vsel %vm1336_vm6, %v1335_v61, %v1334_v58 }
 0x322   :  { %v1134_v8 = vadd.f32 %v3798_v63, %v1126_v7  ;;  %v1118_v14 = vrot.slane %v1117_v57, 1  ;;  %v1189_v42 = vadd.f32 %v1188_v12, %v1187_v3  ;;  %v1198_v20 = vadd.f32 %v1197_v13, %v1196_v51  ;;  %v3262_v63 = vld [vmem:[%s4825_s9] ss:$0 sm:$0xff]  ;;  %s4045_s9 = smov 88  }
 0x323   :  { %3685 = vmatpush3.bf16.msra.mxu1 %v3684_v59 }
 0x324   :  { %3801 = vrcp.f32 %v1134_v8  ;;  %v1119_v11 = vadd.f32 %v1118_v14, %v1117_v57  ;;  %v1190_v55 = vrot.slane %v1189_v42, 1  ;;  %v1287_v49 = vadd.f32 %v1279_v19, %v1198_v20  ;;  %3522 = vmatprep.subr.mxu1 %v4041_v1 }
 0x326   :  { %v1133_v9 = vadd.f32 %v3800_v2, %v1119_v11  ;;  %v1191_v31 = vadd.f32 %v1190_v55, %v1189_v42 }
 0x328   :  { %3803 = vrcp.f32 %v1133_v9  ;;  %v1286_v17 = vadd.f32 %v1278_v47, %v1191_v31 }
 0x32e   :  { %v3802_v37 = vpop.eup %3801 }
 0x32f   :  { %v1303_v40 = vmul.f32 %v3802_v37, %v1287_v49 }
 0x331   :  { %v1341_v10 = vrot.slane %v1303_v40, 1 }
 0x332   :  { %v3804_v21 = vpop.eup %3803 }
 0x333   :  { %v1301_v22 = vmul.f32 %v3804_v21, %v1286_v17 }
 0x335   :  { %v1338_v23 = vrot.slane %v1301_v22, 2 }
 0x337   :  { %v1340_v28 = vsel %vm1339_vm7, %v1338_v23, %v1337_v29 }
 0x338   :  { %v1343_v25 = vsel %vm1342_vm8, %v1341_v10, %v1340_v28 }
 0x339   :  { %3504 = vmatmul.mubr.msk.f32.vlgmr.msra.gmra.mrb[10].mxu0 %vm181_vm1, %v1343_v25 }
 0x33a   :  { %3519 = vmatprep.mubr.msk.f32.mxu0 %vm4040_vm0, %v4041_v1 }
 0x40c   :  { %v1412_v26 = vpop.f32.mrb[10].mxu0 }
 0x40d   :  { %v1413_v34 = vadd.f32 %v3258_v33, %v1412_v26  ;;  %v3505_v30 = vpop.f32.mrb[11].mxu0 }
 0x40f   :  { %v1416_v35 = vadd.f32 %v3843_v15, %v1413_v34 }
 0x411   :  { %v1419_v38 = vsel %vm181_vm1, %v1416_v35, 0.0 }
 0x412   :  { %1420 = vadd.xlane.f32.xlu1 %v1419_v38 }
 0x49f   :  { %v1421_v39 = vpop.xlane.xlu1 %1420 }
 0x4a0   :  { %v1423_v41 = vmul.f32 0.03125, %v1421_v39 }
 0x4a2   :  { %v1424_v43 = vsub.f32 %v1416_v35, %v1423_v41 }
 0x4a4   :  { %v1425_v46 = vmul.f32 %v1424_v43, %v1424_v43 }
 0x4a6   :  { %v1426_v44 = vsel %vm181_vm1, %v1425_v46, 0.0 }
 0x4a7   :  { %1427 = vadd.xlane.f32.xlu0 %v1426_v44 }
 0x534   :  { %v1428_v52 = vpop.xlane.xlu0 %1427 }
 0x535   :  { %v1429_v32 = vmul.f32 0.03125, %v1428_v52 }
 0x537   :  { %v1430_v18 = vadd.f32 1e-05, %v1429_v32 }
 0x539   :  { %3805 = vrsqrt.f32 %v1430_v18 }
 0x543   :  { %v3806_v53 = vpop.eup %3805 }
 0x544   :  { %v1432_v27 = vmul.f32 %v3806_v53, %v1424_v43 }
 0x546   :  { %v1439_v54 = vmul.f32 %v3260_v6, %v1432_v27 }
 0x548   :  { %v4586_v56 = vadd.f32 %v3261_v16, %v1439_v54 }
 0x54a   :  { %3515 = vmatmul.mubr.msk.f32.vlgmr.msra.gmra.mrb[18].mxu1 %vm181_vm1, %v4586_v56 }
 0x54b   :  { %3524 = vmatprep.mubr.msk.f32.mxu1 %vm4040_vm0, %v4041_v1 }
 0x61d   :  { %v1527_v36 = vpop.f32.mrb[18].mxu1 }
 0x61e   :  { %v4595_v60 = vadd.f32 %v3262_v63, %v1527_v36  ;;  %v3516_v3 = vpop.f32.mrb[19].mxu1 }
 0x620   :  { %1536 = vrot.lane.b32.xlu0 %v4595_v60, %s4042_s12  ;;  %v4601_v51 = vcombine.high %v4595_v60, %v4595_v60  ;;  %v4606_v61 = vmul.f32 0.35355338, %v4595_v60 }
 0x622   :  { %1613 = vrot.lane.b32.xlu1 %v4601_v51, %s4042_s12  ;;  %v4615_v7 = vcombine.high %v4606_v61, %v4606_v61  ;;  %s4048_s12 = smov 80  }
 0x692   :  { %v1537_v58 = vpop.permute.xlu0 %1536 }
 0x693   :  { %3518 = vmatpush3.xpose.msk.msra.mxu0 %vm1538_vm9, %v1537_v58 }
 0x694   :  { %v1614_v62 = vpop.permute.xlu1 %1613  ;;  %3527 = vmatprep.subr.mxu0 %v4041_v1 }
 0x695   :  { %3523 = vmatpush3.xpose.msk.msra.mxu1 %vm1538_vm9, %v1614_v62 }
 0x696   :  { %3520 = vmatmul.mubr.msk.f32.vlgmr.msra.gmra.mrb[12].mxu0 %vm1538_vm9, %v4606_v61  ;;  %3532 = vmatprep.subr.mxu1 %v4041_v1 }
 0x697   :  { %3529 = vmatprep.mubr.msk.f32.mxu0 %vm4040_vm0, %v4041_v1 }
 0x698   :  { %3525 = vmatmul.mubr.msk.f32.vlgmr.msra.gmra.mrb[20].mxu1 %vm1538_vm9, %v4615_v7 }
 0x699   :  { %3534 = vmatprep.mubr.msk.f32.mxu1 %vm4040_vm0, %v4041_v1 }
 0x769   :  { %v1609_v57 = vpop.f32.mrb[12].mxu0 }
 0x76a   :  { %v3521_v12 = vpop.f32.mrb[13].mxu0  ;;  %v1690_v13 = vsel %vm1689_vm10, %v1609_v57, -inf }
 0x76b   :  { %v1685_v19 = vpop.f32.mrb[20].mxu1  ;;  %1691 = vmax.xlane.f32.xlu1 %v1690_v13 }
 0x76c   :  { %v3526_v29 = vpop.f32.mrb[21].mxu1  ;;  %v1693_v8 = vsel %vm1689_vm10, %v1685_v19, -inf }
 0x76d   :  { %1694 = vmax.xlane.f32.xlu0 %v1693_v8 }
 0x77c   :  { %1791 = vrot.lane.b32.xlu1 %v4601_v51, %s4043_s4 }
 0x780   :  { %1875 = vrot.lane.b32.xlu1 %v4595_v60, %s4045_s9 }
 0x783   :  { %1712 = vrot.lane.b32.xlu0 %v4595_v60, %s4043_s4  ;;  %s4049_s4 = smov 112  }
 0x787   :  { %1953 = vrot.lane.b32.xlu0 %v4601_v51, %s4045_s9 }
 0x7f8   :  { %v1692_v14 = vpop.xlane.xlu1 %1691 }
 0x7f9   :  { %v1696_v42 = vsub.f32 %v1609_v57, %v1692_v14 }
 0x7fa   :  { %v1695_v20 = vpop.xlane.xlu0 %1694 }
 0x7fb   :  { %v1698_v2 = vmul.f32 1.442695, %v1696_v42  ;;  %v1697_v11 = vsub.f32 %v1685_v19, %v1695_v20 }
 0x7fc   :  { %v1792_v55 = vpop.permute.xlu1 %1791 }
 0x7fd   :  { %3807 = vpow2.f32 %v1698_v2  ;;  %v1700_v49 = vmul.f32 1.442695, %v1697_v11  ;;  %3533 = vmatpush3.msk.msra.mxu1 %vm1718_vm11, %v1792_v55 }
 0x7fe   :  { %v1713_v24 = vpop.permute.xlu0 %1712  ;;  %3542 = vmatprep.subr.mxu1 %v4041_v1 }
 0x7ff   :  { %3809 = vpow2.f32 %v1700_v49  ;;  %3528 = vmatpush3.msk.msra.mxu0 %vm1718_vm11, %v1713_v24 }
 0x800   :  { %3537 = vmatprep.subr.mxu0 %v4041_v1  ;;  %v1876_v40 = vpop.permute.xlu1 %1875 }
 0x802   :  { %v1954_v37 = vpop.permute.xlu0 %1953 }
 0x807   :  { %v3808_v9 = vpop.eup %3807 }
 0x808   :  { %v1702_v31 = vsel %vm1689_vm10, %v3808_v9, 0.0 }
 0x809   :  { %v3810_v47 = vpop.eup %3809  ;;  %1703 = vadd.xlane.f32.xlu0 %v1702_v31 }
 0x80a   :  { %v1705_v17 = vsel %vm1689_vm10, %v3810_v47, 0.0 }
 0x80b   :  { %1706 = vadd.xlane.f32.xlu1 %v1705_v17 }
 0x81c   :  { %1873 = vrot.lane.b32.xlu1 %v4606_v61, %s4046_s16 }
 0x81f   :  { %1951 = vrot.lane.b32.xlu0 %v4615_v7, %s4046_s16 }
 0x896   :  { %v1704_v21 = vpop.xlane.xlu0 %1703 }
 0x897   :  { %3811 = vrcp.f32 %v1704_v21 }
 0x898   :  { %v1707_v22 = vpop.xlane.xlu1 %1706 }
 0x899   :  { %3813 = vrcp.f32 %v1707_v22 }
 0x89a   :  { %v1952_v26 = vpop.permute.xlu0 %1951 }
 0x89c   :  { %v1874_v33 = vpop.permute.xlu1 %1873 }
 0x8a1   :  { %v3812_v23 = vpop.eup %3811 }
 0x8a2   :  { %v1709_v10 = vmul.f32 %v3812_v23, %v3808_v9 }
 0x8a3   :  { %v3814_v28 = vpop.eup %3813 }
 0x8a4   :  { %v1711_v25 = vmul.f32 %v3814_v28, %v3810_v47  ;;  %3530 = vmatmul.mubr.msk.f32.vlgmr.msra.gmra.mrb[14].mxu0 %vm1714_vm12, %v1709_v10 }
 0x8a5   :  { %3538 = vmatpush3.xpose.msk.msra.mxu0 %vm1538_vm9, %v1876_v40  ;;  %3539 = vmatprep.mubr.msk.f32.mxu0 %vm4040_vm0, %v4041_v1 }
 0x8a6   :  { %3535 = vmatmul.mubr.msk.f32.vlgmr.msra.gmra.mrb[22].mxu1 %vm1714_vm12, %v1711_v25  ;;  %3547 = vmatprep.subr.mxu0 %v4041_v1 }
 0x8a7   :  { %3543 = vmatpush3.xpose.msk.msra.mxu1 %vm1538_vm9, %v1954_v37  ;;  %3544 = vmatprep.mubr.msk.f32.mxu1 %vm4040_vm0, %v4041_v1 }
 0x8a8   :  { %3540 = vmatmul.mubr.msk.f32.vlgmr.msra.gmra.mrb[16].mxu0 %vm1538_vm9, %v1874_v33  ;;  %3552 = vmatprep.subr.mxu1 %v4041_v1 }
 0x8a9   :  { %3549 = vmatprep.mubr.msk.f32.mxu0 %vm4040_vm0, %v4041_v1 }
 0x8aa   :  { %3545 = vmatmul.mubr.msk.f32.vlgmr.msra.gmra.mrb[24].mxu1 %vm1538_vm9, %v1952_v26 }
 0x8ab   :  { %3554 = vmatprep.mubr.msk.f32.mxu1 %vm4040_vm0, %v4041_v1 }
 0x977   :  { %v1787_v34 = vpop.f32.mrb[14].mxu0 }
 0x978   :  { %v3531_v30 = vpop.f32.mrb[15].mxu0 }
 0x979   :  { %v1864_v15 = vpop.f32.mrb[22].mxu1 }
 0x97a   :  { %v1870_v35 = vcombine.low %v1787_v34, %v1864_v15  ;;  %v3536_v38 = vpop.f32.mrb[23].mxu1 }
 0x97b   :  { %v1947_v39 = vpop.f32.mrb[16].mxu0 }
 0x97c   :  { %1872 = vst.msk [vmem:[#allocation2] sm:$0xff] %vm1538_vm9, %v1870_v35  ;;  %v3541_v41 = vpop.f32.mrb[17].mxu0  ;;  %v2029_v43 = vsel %vm1689_vm10, %v1947_v39, -inf }
 0x97d   :  { %v2025_v46 = vpop.f32.mrb[24].mxu1  ;;  %2030 = vmax.xlane.f32.xlu1 %v2029_v43 }
 0x97e   :  { %v3546_v44 = vpop.f32.mrb[25].mxu1  ;;  %v2032_v4 = vsel %vm1689_vm10, %v2025_v46, -inf }
 0x97f   :  { %2033 = vmax.xlane.f32.xlu0 %v2032_v4 }
 0x98e   :  { %2128 = vrot.lane.b32.xlu1 %v4601_v51, %s4047_s17 }
 0x992   :  { %2215 = vrot.lane.b32.xlu1 %v4595_v60, %s4048_s12 }
 0x995   :  { %2051 = vrot.lane.b32.xlu0 %v4595_v60, %s4047_s17 }
 0x999   :  { %2293 = vrot.lane.b32.xlu0 %v4601_v51, %s4048_s12 }
 0xa0a   :  { %v2031_v5 = vpop.xlane.xlu1 %2030 }
 0xa0b   :  { %v2035_v48 = vsub.f32 %v1947_v39, %v2031_v5 }
 0xa0c   :  { %v2034_v50 = vpop.xlane.xlu0 %2033 }
 0xa0d   :  { %v2037_v45 = vmul.f32 1.442695, %v2035_v48  ;;  %v2036_v59 = vsub.f32 %v2025_v46, %v2034_v50 }
 0xa0e   :  { %v2129_v52 = vpop.permute.xlu1 %2128 }
 0xa0f   :  { %3815 = vpow2.f32 %v2037_v45  ;;  %v2039_v32 = vmul.f32 1.442695, %v2036_v59  ;;  %3553 = vmatpush3.msk.msra.mxu1 %vm1718_vm11, %v2129_v52 }
 0xa10   :  { %v2052_v18 = vpop.permute.xlu0 %2051  ;;  %3562 = vmatprep.subr.mxu1 %v4041_v1 }
 0xa11   :  { %3817 = vpow2.f32 %v2039_v32  ;;  %3548 = vmatpush3.msk.msra.mxu0 %vm1718_vm11, %v2052_v18 }
 0xa12   :  { %3557 = vmatprep.subr.mxu0 %v4041_v1  ;;  %v2216_v63 = vpop.permute.xlu1 %2215 }
 0xa14   :  { %v2294_v54 = vpop.permute.xlu0 %2293 }
 0xa19   :  { %v3816_v53 = vpop.eup %3815 }
 0xa1a   :  { %v2041_v6 = vsel %vm1689_vm10, %v3816_v53, 0.0 }
 0xa1b   :  { %v3818_v27 = vpop.eup %3817  ;;  %2042 = vadd.xlane.f32.xlu0 %v2041_v6 }
 0xa1c   :  { %v2044_v16 = vsel %vm1689_vm10, %v3818_v27, 0.0 }
 0xa1d   :  { %2045 = vadd.xlane.f32.xlu1 %v2044_v16 }
 0xa2e   :  { %2213 = vrot.lane.b32.xlu1 %v4606_v61, %s4049_s4 }
 0xa31   :  { %2291 = vrot.lane.b32.xlu0 %v4615_v7, %s4049_s4 }
 0xaa8   :  { %v2043_v36 = vpop.xlane.xlu0 %2042 }
 0xaa9   :  { %3819 = vrcp.f32 %v2043_v36 }
 0xaaa   :  { %v2046_v3 = vpop.xlane.xlu1 %2045 }
 0xaab   :  { %3821 = vrcp.f32 %v2046_v3 }
 0xaac   :  { %v2292_v19 = vpop.permute.xlu0 %2291 }
 0xaae   :  { %v2214_v13 = vpop.permute.xlu1 %2213 }
 0xab3   :  { %v3820_v58 = vpop.eup %3819 }
 0xab4   :  { %v2048_v62 = vmul.f32 %v3820_v58, %v3816_v53 }
 0xab5   :  { %v3822_v57 = vpop.eup %3821 }
 0xab6   :  { %v2050_v12 = vmul.f32 %v3822_v57, %v3818_v27  ;;  %3550 = vmatmul.mubr.msk.f32.vlgmr.msra.gmra.mrb[18].mxu0 %vm1714_vm12, %v2048_v62 }
 0xab7   :  { %3558 = vmatpush3.xpose.msk.msra.mxu0 %vm1538_vm9, %v2216_v63  ;;  %3559 = vmatprep.mubr.msk.f32.mxu0 %vm4040_vm0, %v4041_v1 }
 0xab8   :  { %3555 = vmatmul.mubr.msk.f32.vlgmr.msra.gmra.mrb[26].mxu1 %vm1714_vm12, %v2050_v12  ;;  %3567 = vmatprep.subr.mxu0 %v4041_v1 }
 0xab9   :  { %3563 = vmatpush3.xpose.msk.msra.mxu1 %vm1538_vm9, %v2294_v54  ;;  %3564 = vmatprep.mubr.msk.f32.mxu1 %vm4040_vm0, %v4041_v1 }
 0xaba   :  { %3560 = vmatmul.mubr.msk.f32.vlgmr.msra.gmra.mrb[20].mxu0 %vm1538_vm9, %v2214_v13  ;;  %3572 = vmatprep.subr.mxu1 %v4041_v1 }
 0xabb   :  { %3569 = vmatprep.mubr.msk.f32.mxu0 %vm4040_vm0, %v4041_v1 }
 0xabc   :  { %3565 = vmatmul.mubr.msk.f32.vlgmr.msra.gmra.mrb[28].mxu1 %vm1538_vm9, %v2292_v19 }
 0xabd   :  { %3574 = vmatprep.mubr.msk.f32.mxu1 %vm4040_vm0, %v4041_v1 }
 0xb89   :  { %v4687_v29 = vpop.f32.mrb[18].mxu0 }
 0xb8a   :  { %v3551_v8 = vpop.f32.mrb[19].mxu0 }
 0xb8b   :  { %v4689_v14 = vpop.f32.mrb[26].mxu1 }
 0xb8c   :  { %v2207_v42 = vcombine.low %v4687_v29, %v4689_v14  ;;  %v3556_v20 = vpop.f32.mrb[27].mxu1 }
 0xb8d   :  { %v2287_v2 = vpop.f32.mrb[20].mxu0  ;;  %v2895_v20 = vld [vmem:[#allocation12 + $0x8] sm:$0xff] }
 0xb8e   :  { %v3561_v11 = vpop.f32.mrb[21].mxu0  ;;  %v2369_v55 = vsel %vm1689_vm10, %v2287_v2, -inf }
 0xb8f   :  { %v2365_v49 = vpop.f32.mrb[28].mxu1  ;;  %2370 = vmax.xlane.f32.xlu1 %v2369_v55  ;;  %v2897_v55 = vld [vmem:[#allocation12 + $0x18] sm:$0xff] }
 0xb90   :  { %v3566_v24 = vpop.f32.mrb[29].mxu1  ;;  %v2372_v9 = vsel %vm1689_vm10, %v2365_v49, -inf }
 0xb91   :  { %2373 = vmax.xlane.f32.xlu0 %v2372_v9 }
 0xba0   :  { %2468 = vrot.lane.b32.xlu1 %v4601_v51, %s4050_s25 }
 0xba4   :  { %2555 = vrot.lane.b32.xlu1 %v4595_v60, %s4051_s0 }
 0xba7   :  { %2391 = vrot.lane.b32.xlu0 %v4595_v60, %s4050_s25 }
 0xbab   :  { %2633 = vrot.lane.b32.xlu0 %v4601_v51, %s4051_s0 }
 0xc1c   :  { %v2371_v31 = vpop.xlane.xlu1 %2370 }
 0xc1d   :  { %v2375_v47 = vsub.f32 %v2287_v2, %v2371_v31  ;;  %v2896_v2 = vld [vmem:[#allocation12 + $0x10] sm:$0xff] }
 0xc1e   :  { %v2374_v17 = vpop.xlane.xlu0 %2373 }
 0xc1f   :  { %v2377_v37 = vmul.f32 1.442695, %v2375_v47  ;;  %v2376_v40 = vsub.f32 %v2365_v49, %v2374_v17  ;;  %v3690_v49 = vpack.c.bf16 %v2897_v55, %v2896_v2 }
 0xc20   :  { %v2469_v21 = vpop.permute.xlu1 %2468 }
 0xc21   :  { %3823 = vpow2.f32 %v2377_v37  ;;  %v2379_v22 = vmul.f32 1.442695, %v2376_v40  ;;  %3573 = vmatpush3.msk.msra.mxu1 %vm1718_vm11, %v2469_v21  ;;  %v3296_v21 = vld [vmem:[%s4827_s11] ss:$0 sm:$0xff]  ;;  %s3219_s11 = sshll.u32 %s4056_s27, 4  ;;  %s3220_s11 = int_to_ptr.vmem [resolvable:$true] %s3219_s11 }
 0xc22   :  { %v2392_v23 = vpop.permute.xlu0 %2391  ;;  %3582 = vmatprep.subr.mxu1 %v4041_v1  ;;  %s3998_s3 = scalar_lea.vmem %s3220_s11, 128  ;;  %p4003_p1 = scmp.lt.s32.totalorder %s3220_s11, %s3220_s11 }
 0xc23   :  { %3825 = vpow2.f32 %v2379_v22  ;;  %3568 = vmatpush3.msk.msra.mxu0 %vm1718_vm11, %v2392_v23  ;;  %p3999_p0 = scmp.ne.s32.totalorder %s3220_s11, %s3998_s3  ;;  %p4004_p2 = scmp.lt.s32.totalorder %s3998_s3, %s3998_s3 }
 0xc24   :  { %3577 = vmatprep.subr.mxu0 %v4041_v1  ;;  %v2556_v34 = vpop.permute.xlu1 %2555 }
 0xc25   :  { %p4005_p3 = por %p4004_p2, %p4003_p1 }
 0xc26   :  { %v2634_v26 = vpop.permute.xlu0 %2633 }
 0xc27   :  { %p4006_p4 = pnand %p4005_p3, %p3999_p0 }
 0xc2b   :  { %v3824_v10 = vpop.eup %3823 }
 0xc2c   :  { %v2381_v28 = vsel %vm1689_vm10, %v3824_v10, 0.0 }
 0xc2d   :  { %v3826_v25 = vpop.eup %3825  ;;  %2382 = vadd.xlane.f32.xlu0 %v2381_v28 }
 0xc2e   :  { %v2384_v33 = vsel %vm1689_vm10, %v3826_v25, 0.0 }
 0xc2f   :  { %2385 = vadd.xlane.f32.xlu1 %v2384_v33 }
 0xc40   :  { %2553 = vrot.lane.b32.xlu1 %v4606_v61, %s4052_s2 }
 0xc43   :  { %2631 = vrot.lane.b32.xlu0 %v4615_v7, %s4052_s2 }
 0xcba   :  { %v2383_v30 = vpop.xlane.xlu0 %2382 }
 0xcbb   :  { %3827 = vrcp.f32 %v2383_v30 }
 0xcbc   :  { %v2386_v15 = vpop.xlane.xlu1 %2385 }
 0xcbd   :  { %3829 = vrcp.f32 %v2386_v15 }
 0xcbe   :  { %v2632_v7 = vpop.permute.xlu0 %2631 }
 0xcc0   :  { %v2554_v61 = vpop.permute.xlu1 %2553 }
 0xcc5   :  { %v3828_v35 = vpop.eup %3827 }
 0xcc6   :  { %v2388_v38 = vmul.f32 %v3828_v35, %v3824_v10  ;;  %v3009_v35 = vld [vmem:[#allocation14 + $0x8] sm:$0xff] }
 0xcc7   :  { %v3830_v39 = vpop.eup %3829 }
 0xcc8   :  { %v2390_v41 = vmul.f32 %v3830_v39, %v3826_v25  ;;  %3570 = vmatmul.mubr.msk.f32.vlgmr.msra.gmra.mrb[22].mxu0 %vm1714_vm12, %v2388_v38  ;;  %v3010_v38 = vld [vmem:[#allocation14 + $0x10] sm:$0xff] }
 0xcc9   :  { %3578 = vmatpush3.xpose.msk.msra.mxu0 %vm1538_vm9, %v2556_v34  ;;  %3579 = vmatprep.mubr.msk.f32.mxu0 %vm4040_vm0, %v4041_v1 }
 0xcca   :  { %3575 = vmatmul.mubr.msk.f32.vlgmr.msra.gmra.mrb[30].mxu1 %vm1714_vm12, %v2390_v41  ;;  %3587 = vmatprep.subr.mxu0 %v4041_v1  ;;  %v3011_v41 = vld [vmem:[#allocation14 + $0x18] sm:$0xff] }
 0xccb   :  { %3583 = vmatpush3.xpose.msk.msra.mxu1 %vm1538_vm9, %v2634_v26  ;;  %3584 = vmatprep.mubr.msk.f32.mxu1 %vm4040_vm0, %v4041_v1 }
 0xccc   :  { %3580 = vmatmul.mubr.msk.f32.vlgmr.msra.gmra.mrb[24].mxu0 %vm1538_vm9, %v2554_v61  ;;  %3592 = vmatprep.subr.mxu1 %v4041_v1  ;;  %v3696_v61 = vpack.c.bf16 %v3011_v41, %v3010_v38 }
 0xccd   :  { %3589 = vmatprep.mubr.msk.f32.mxu0 %vm4040_vm0, %v4041_v1 }
 0xcce   :  { %3585 = vmatmul.mubr.msk.f32.vlgmr.msra.gmra.mrb[32].mxu1 %vm1538_vm9, %v2632_v7  ;;  %v3094_v7 = vld [vmem:[%s4830_s14 + $0x8] sm:$0xff] }
 0xccf   :  { %3594 = vmatprep.mubr.msk.f32.mxu1 %vm4040_vm0, %v4041_v1 }
 0xd9b   :  { %v2464_v43 = vpop.f32.mrb[22].mxu0 }
 0xd9c   :  { %v3571_v46 = vpop.f32.mrb[23].mxu0 }
 0xd9d   :  { %v2541_v44 = vpop.f32.mrb[30].mxu1 }
 0xd9e   :  { %v2547_v4 = vcombine.low %v2464_v43, %v2541_v44  ;;  %v3576_v5 = vpop.f32.mrb[31].mxu1  ;;  %v3095_v43 = vld [vmem:[%s4830_s14 + $0x10] sm:$0xff]  ;;  %v3096_v44 = vld [vmem:[%s4830_s14 + $0x18] sm:$0xff] }
 0xd9f   :  { %v2627_v48 = vpop.f32.mrb[24].mxu0  ;;  %v3097_v5 = vld [vmem:[%s4830_s14 + $0x20] sm:$0xff] }
 0xda0   :  { %v3581_v50 = vpop.f32.mrb[25].mxu0  ;;  %v2709_v45 = vsel %vm1689_vm10, %v2627_v48, -inf }
 0xda1   :  { %v2705_v59 = vpop.f32.mrb[32].mxu1  ;;  %2710 = vmax.xlane.f32.xlu1 %v2709_v45 }
 0xda2   :  { %v3586_v52 = vpop.f32.mrb[33].mxu1  ;;  %v2712_v32 = vsel %vm1689_vm10, %v2705_v59, -inf }
 0xda3   :  { %2713 = vmax.xlane.f32.xlu0 %v2712_v32 }
 0xe2e   :  { %v2711_v18 = vpop.xlane.xlu1 %2710 }
 0xe2f   :  { %v2715_v53 = vsub.f32 %v2627_v48, %v2711_v18  ;;  %v3098_v48 = vld [vmem:[%s4830_s14 + $0x28] sm:$0xff]  ;;  %v3298_v18 = vld [vmem:[%s4834_s18] ss:$0 sm:$0xff] }
 0xe30   :  { %v2714_v6 = vpop.xlane.xlu0 %2713  ;;  %v3705_v50 = vpack.c.bf16 %v3098_v48, %v3097_v5 }
 0xe31   :  { %v2717_v27 = vmul.f32 1.442695, %v2715_v53  ;;  %v2716_v16 = vsub.f32 %v2705_v59, %v2714_v6  ;;  %v3299_v6 = vld [vmem:[%s4835_s19] ss:$0 sm:$0xff] }
 0xe33   :  { %3831 = vpow2.f32 %v2717_v27  ;;  %v2719_v54 = vmul.f32 1.442695, %v2716_v16 }
 0xe35   :  { %3833 = vpow2.f32 %v2719_v54  ;;  %v3100_v54 = vld [vmem:[%s4830_s14 + $0x38] sm:$0xff] }
 0xe3d   :  { %v3832_v63 = vpop.eup %3831 }
 0xe3e   :  { %v2721_v36 = vsel %vm1689_vm10, %v3832_v63, 0.0 }
 0xe3f   :  { %v3834_v3 = vpop.eup %3833  ;;  %2722 = vadd.xlane.f32.xlu0 %v2721_v36  ;;  %v3300_v36 = vld [vmem:[%s4829_s13] ss:$0 sm:$0xff] }
 0xe40   :  { %v2724_v58 = vsel %vm1689_vm10, %v3834_v3, 0.0 }
 0xe41   :  { %2725 = vadd.xlane.f32.xlu1 %v2724_v58 }
 0xe52   :  { %2808 = vrot.lane.b32.xlu1 %v4601_v51, %s4053_s22 }
 0xe55   :  { %2731 = vrot.lane.b32.xlu0 %v4595_v60, %s4053_s22 }
 0xe56   :  { %2208 = vrot.lane.b32.xlu1 %v2207_v42, %s4032_s26  ;;  %v2894_v42 = vld [vmem:[#allocation12] sm:$0xff]  ;;  %s4055_s26 = smov 24  }
 0xe57   :  { %v3687_v11 = vpack.c.bf16 %v2895_v20, %v2894_v42 }
 0xe59   :  { %2548 = vrot.lane.b32.xlu0 %v2547_v4, %s4054_s21  ;;  %v3702_v4 = vpack.c.bf16 %v3096_v44, %v3095_v43 }
 0xecc   :  { %v2723_v62 = vpop.xlane.xlu0 %2722 }
 0xecd   :  { %3835 = vrcp.f32 %v2723_v62 }
 0xece   :  { %v2726_v57 = vpop.xlane.xlu1 %2725 }
 0xecf   :  { %3837 = vrcp.f32 %v2726_v57 }
 0xed0   :  { %v2732_v12 = vpop.permute.xlu0 %2731 }
 0xed1   :  { %3588 = vmatpush3.msk.msra.mxu0 %vm1718_vm11, %v2732_v12  ;;  %v3302_v12 = vld [vmem:[%s4831_s15] ss:$0 sm:$0xff]  ;;  %s4863_s15 = sld [smem:[#allocation28_spill]] }
 0xed2   :  { %v2809_v13 = vpop.permute.xlu1 %2808  ;;  %3686 = vmatprep.subr.bf16.mxu0 %v4039_v0 }
 0xed3   :  { %3593 = vmatpush3.msk.msra.mxu1 %vm1718_vm11, %v2809_v13 }
 0xed4   :  { %3692 = vmatprep.subr.bf16.mxu1 %v4039_v0  ;;  %v2549_v19 = vpop.permute.xlu0 %2548 }
 0xed6   :  { %v2209_v60 = vpop.permute.xlu1 %2208 }
 0xed7   :  { %v3836_v51 = vpop.eup %3835  ;;  %2212 = vst.msk [vmem:[#allocation2] sm:$0xff] %vm2211_vm13, %v2209_v60 }
 0xed8   :  { %v2728_v29 = vmul.f32 %v3836_v51, %v3832_v63  ;;  %2552 = vst.msk [vmem:[#allocation2] sm:$0xff] %vm2551_vm14, %v2549_v19 }
 0xed9   :  { %v3838_v8 = vpop.eup %3837 }
 0xeda   :  { %v2730_v14 = vmul.f32 %v3838_v8, %v3834_v3  ;;  %3590 = vmatmul.mubr.msk.f32.vlgmr.msra.gmra.mrb[26].mxu0 %vm1714_vm12, %v2728_v29 }
 0xedb   :  { %3605 = vmatprep.mubr.msk.f32.mxu0 %vm4040_vm0, %v4041_v1  ;;  %3688 = vmatpush3.bf16.msra.mxu0 %v3687_v11 }
 0xedc   :  { %3595 = vmatmul.mubr.msk.f32.vlgmr.msra.gmra.mrb[34].mxu1 %vm1714_vm12, %v2730_v14  ;;  %3689 = vmatprep.subr.bf16.mxu0 %v4039_v0 }
 0xedd   :  { %3616 = vmatprep.mubr.msk.f32.mxu1 %vm4040_vm0, %v4041_v1 }
 0xedf   :  { %3691 = vmatpush3.bf16.msra.mxu0 %v3690_v49 }
 0xee0   :  { %3698 = vmatprep.subr.bf16.mxu0 %v4039_v0 }
 0xfad   :  { %v2804_v24 = vpop.f32.mrb[26].mxu0 }
 0xfae   :  { %v3591_v9 = vpop.f32.mrb[27].mxu0 }
 0xfaf   :  { %v2881_v31 = vpop.f32.mrb[34].mxu1  ;;  %v3304_v9 = vld [vmem:[%s4863_s15] ss:$0 sm:$0xff] }
 0xfb0   :  { %v2887_v47 = vcombine.low %v2804_v24, %v2881_v31  ;;  %v3596_v17 = vpop.f32.mrb[35].mxu1 }
 0xfb2   :  { %2888 = vrot.lane.b32.xlu1 %v2887_v47, %s4055_s26  ;;  %v3305_v47 = vld [vmem:[%s4864_s24] ss:$0 sm:$0xff] }
0x1024   :  { %v2889_v37 = vpop.permute.xlu1 %2888 }
0x1025   :  { %2892 = vst.msk [vmem:[#allocation2] sm:$0xff] %vm2891_vm15, %v2889_v37 }
0x102c   :  { %v2893_v40 = vld [vmem:[#allocation2] sm:$0xff] }
0x102d   :  { %3606 = vmatmul.mubr.msk.f32.vlgmr.msra.gmra.mrb[28].mxu0 %vm181_vm1, %v2893_v40 }
0x102e   :  { %3635 = vmatprep.mubr.msk.f32.mxu0 %vm4040_vm0, %v4041_v1  ;;  %v3008_v1 = vld [vmem:[#allocation14] sm:$0xff]  ;;  %vm3108_vm0 = vcmask 523264  }
0x102f   :  { %v3693_v39 = vpack.c.bf16 %v3009_v35, %v3008_v1 }
0x1031   :  { %3694 = vmatpush3.bf16.msra.mxu1 %v3693_v39 }
0x1032   :  { %3695 = vmatprep.subr.bf16.mxu1 %v4039_v0 }
0x1035   :  { %3697 = vmatpush3.bf16.msra.mxu1 %v3696_v61 }
0x1100   :  { %v2974_v22 = vpop.f32.mrb[28].mxu0 }
0x1101   :  { %v2975_v23 = vadd.f32 %v3296_v21, %v2974_v22  ;;  %v3607_v10 = vpop.f32.mrb[29].mxu0 }
0x1103   :  { %v2978_v28 = vadd.f32 %v2975_v23, %v4586_v56  ;;  %v3093_v56 = vld [vmem:[%s4830_s14] sm:$0xff] }
0x1104   :  { %v3699_v46 = vpack.c.bf16 %v3094_v7, %v3093_v56 }
0x1105   :  { %v2981_v25 = vsel %vm181_vm1, %v2978_v28, 0.0 }
0x1106   :  { %2982 = vadd.xlane.f32.xlu0 %v2981_v25  ;;  %3700 = vmatpush3.bf16.msra.mxu0 %v3699_v46 }
0x1107   :  { %3701 = vmatprep.subr.bf16.mxu0 %v4039_v0 }
0x110a   :  { %3703 = vmatpush3.bf16.msra.mxu0 %v3702_v4 }
0x110b   :  { %3704 = vmatprep.subr.bf16.mxu0 %v4039_v0 }
0x110e   :  { %3706 = vmatpush3.bf16.msra.mxu0 %v3705_v50 }
0x110f   :  { %3707 = vmatprep.subr.bf16.mxu0 %v4039_v0  ;;  %v3099_v0 = vld [vmem:[%s4830_s14 + $0x30] sm:$0xff] }
0x1110   :  { %v3708_v63 = vpack.c.bf16 %v3100_v54, %v3099_v0 }
0x1112   :  { %3709 = vmatpush3.bf16.msra.mxu0 %v3708_v63 }
0x1193   :  { %v2983_v33 = vpop.xlane.xlu0 %2982 }
0x1194   :  { %v2984_v26 = vmul.f32 0.03125, %v2983_v33 }
0x1196   :  { %v2985_v34 = vsub.f32 %v2978_v28, %v2984_v26 }
0x1198   :  { %v2986_v30 = vmul.f32 %v2985_v34, %v2985_v34 }
0x119a   :  { %v2987_v15 = vsel %vm181_vm1, %v2986_v30, 0.0 }
0x119b   :  { %2988 = vadd.xlane.f32.xlu1 %v2987_v15 }
0x1228   :  { %v2989_v45 = vpop.xlane.xlu1 %2988 }
0x1229   :  { %v2990_v59 = vmul.f32 0.03125, %v2989_v45 }
0x122b   :  { %v2991_v52 = vadd.f32 1e-05, %v2990_v59 }
0x122d   :  { %3839 = vrsqrt.f32 %v2991_v52 }
0x1237   :  { %v3840_v32 = vpop.eup %3839 }
0x1238   :  { %v2993_v53 = vmul.f32 %v3840_v32, %v2985_v34 }
0x123a   :  { %v3000_v27 = vmul.f32 %v3298_v18, %v2993_v53 }
0x123c   :  { %v3007_v16 = vadd.f32 %v3299_v6, %v3000_v27 }
0x123e   :  { %3617 = vmatmul.mubr.msk.f32.vlgmr.msra.gmra.mrb[36].mxu1 %vm181_vm1, %v3007_v16 }
0x1311   :  { %v3088_v3 = vpop.f32.mrb[36].mxu1 }
0x1312   :  { %v3089_v58 = vadd.f32 %v3300_v36, %v3088_v3  ;;  %v3618_v62 = vpop.f32.mrb[37].mxu1 }
0x1314   :  { %v3092_v57 = vmax.f32 %v3089_v58, 0.0 }
0x1316   :  { %3636 = vmatmul.mubr.msk.f32.vlgmr.msra.gmra.mrb[30].mxu0 %vm3108_vm0, %v3092_v57 }
0x13e9   :  { %v3178_v13 = vpop.f32.mrb[30].mxu0 }
0x13ea   :  { %v3179_v60 = vadd.f32 %v3302_v12, %v3178_v13  ;;  %v3637_v51 = vpop.f32.mrb[31].mxu0 }
0x13ec   :  { %v3182_v19 = vadd.f32 %v3179_v60, %v3007_v16 }
0x13ee   :  { %v3185_v29 = vsel %vm181_vm1, %v3182_v19, 0.0 }
0x13ef   :  { %3186 = vadd.xlane.f32.xlu0 %v3185_v29 }
0x147c   :  { %v3187_v8 = vpop.xlane.xlu0 %3186 }
0x147d   :  { %v3188_v14 = vmul.f32 0.03125, %v3187_v8 }
0x147f   :  { %v3189_v42 = vsub.f32 %v3182_v19, %v3188_v14 }
0x1481   :  { %v3190_v20 = vmul.f32 %v3189_v42, %v3189_v42 }
0x1483   :  { %v3191_v2 = vsel %vm181_vm1, %v3190_v20, 0.0 }
0x1484   :  { %3192 = vadd.xlane.f32.xlu0 %v3191_v2 }
0x1511   :  { %v3193_v11 = vpop.xlane.xlu0 %3192 }
0x1512   :  { %v3194_v55 = vmul.f32 0.03125, %v3193_v11 }
0x1514   :  { %v3195_v49 = vadd.f32 1e-05, %v3194_v55 }
0x1516   :  { %3841 = vrsqrt.f32 %v3195_v49 }
0x1520   :  { %v3842_v24 = vpop.eup %3841 }
0x1521   :  { %v3197_v31 = vmul.f32 %v3842_v24, %v3189_v42 }
0x1523   :  { %v3204_v17 = vmul.f32 %v3304_v9, %v3197_v31 }
0x1525   :  { %v3211_v37 = vadd.f32 %v3305_v47, %v3204_v17 }
0x1527   :  { %3212 = vst.msk [vmem:[#allocation15] sm:$0xff] %vm181_vm1, %v3211_v37 }
0x1528   :  { %4009 = shalt.err (!%p4006_p4)
}
0x1529   :  { %s4865_s30 = sld [smem:[#allocation30_spill]] }
0x152f   :  { %s4010_s28 = scalar_lea.hbm %s4865_s30, 128 }
0x1530   :  { %p4011_p5 = scmp.ne.s32.totalorder %s4865_s30, %s4010_s28  ;;  %p4014_p6 = scmp.lt.u32.totalorder %s4010_s28, %s4865_s30 }
0x1532   :  { %p4016_p7 = pnand %p4014_p6, %p4011_p5 }
0x1534   :  { %4019 = shalt.err (!%p4016_p7)
}
0x1535   :  { %3222 = dma.vmem_to_hbm [thread:$0]  %s3220_s11, 128, %s4865_s30, [#allocation5]  }
0x1536   :  { %4028 = dma.done.wait [#allocation5], 128  }
0x1537   :  { %4029 = vsyncadd [#allocation5], 4294967168 }
0x1538   :  { %3226 = vsyncpa [#allocation4], 1 }
0x1539   :  { %3227 = vsyncpa [#allocation7], 1 }
0x153a   :  { %3228 = vsyncpa [#allocation10], 1 }
0x153b   :  { %3229 = vsyncpa [#allocation13], 1 }
0x153c   :  { %3230 = vsyncpa [#allocation5], 1 }

</bundles_post_ra>
